<compile_context>
chip_gen: v7x
topology: tpu7x:2x2x1
jax: 0.10.0
libtpu: 0.0.40
codegen_flags: <defaults>
</compile_context>

<pallas_src>
import functools

import jax
import jax.numpy as jnp
from jax.experimental import pallas as pl
from jax.experimental.pallas import tpu as pltpu


def _vmem_limit_bytes(step_bytes):
    """Pick a scoped-VMEM limit for the current TPU generation."""
    try:
        phys = pltpu.get_tpu_info().vmem_capacity_bytes
    except Exception:
        phys = 64 * 1024 * 1024  # conservative: v7x physical VMEM per core
    cap = min(96 * 1024 * 1024, phys - 16 * 1024 * 1024)
    return int(min(max(step_bytes, 32 * 1024 * 1024), cap))


def seghead_kernel(x_ref, w1_ref, shift_ref, w2_ref, b2_ref, o_ref):
    """One (image, row-tile) grid step.

    x_ref:     (1, 1, TH+2, W+2, Cin) bf16  halo'd input row tile
    w1_ref:    (9, Cin, Cmid)         bf16  3x3 weights (BN scale folded in)
    shift_ref: (1, Cmid)              f32   folded BN shift
    w2_ref:    (Cmid, Ncls)           bf16  1x1 conv weight
    b2_ref:    (1, Ncls)              f32   1x1 conv bias
    o_ref:     (1, TH, W, Ncls)       bf16 (default) or f32
    """
    tile_h = o_ref.shape[1]
    width = o_ref.shape[2]
    cin = x_ref.shape[4]
    cmid = w1_ref.shape[2]

    x_tile = x_ref[0, 0]                               # (TH+2, W+2, Cin)

    # 3x3 conv as 9 accumulating MXU matmuls with K = Cin, f32 accumulation.
    # Taps are static in-VMEM slices of the halo'd tile (dy over a leading dim
    # is free; dx is a cheap sublane window).
    acc = jnp.zeros((tile_h * width, cmid), jnp.float32)
    for dy in range(3):
        for dx in range(3):
            lhs = x_tile[dy:dy + tile_h, dx:dx + width, :]
            lhs = lhs.reshape(tile_h * width, cin)
            acc = acc + jnp.dot(lhs, w1_ref[dy * 3 + dx],
                                preferred_element_type=jnp.float32)

    # Folded BatchNorm (eval) + ReLU; scale already folded into w1.
    mid = jnp.maximum(acc + shift_ref[...], 0.0)

    # 1x1 conv (matmul) + bias; store exactly Ncls (no 128 padding).
    out = jnp.dot(mid.astype(w2_ref.dtype), w2_ref[...],
                  preferred_element_type=jnp.float32) + b2_ref[...]
    o_ref[0] = out.reshape(tile_h, width, -1).astype(o_ref.dtype)


@functools.partial(jax.jit, static_argnames=("eps", "row_tile", "out_dtype"))
def seghead_forward(x_nhwc, w1_hwio, gamma, beta, run_mean, run_var, w2, b2,
                    eps=1e-5, row_tile=32, out_dtype=jnp.bfloat16):
    """x_nhwc: (N, H, W, Cin) float32. Returns (N, H, W, Ncls) in out_dtype.

    row_tile: output rows per grid step.  Sweep 16/32/64 at production sizes;
    pick the largest tile whose double-buffered (halo tile + output tile +
    weights) footprint fits the per-generation VMEM budget (use roughly half
    the v5e/v6e tile on v7x's 64 MiB VMEM), and keep H // tile_h even so the
    "parallel" grid axes split cleanly across 2 TensorCores.
    """
    N, H, W, Cin = x_nhwc.shape
    Cmid = w1_hwio.shape[3]
    Ncls = w2.shape[1]

    # W is the sublane dim: multiples of 8 required; 16 preferred for bf16
    # (16,128) packing so the (TH, W, C) -> (TH*W, C) merge stays cheap.
    assert W % 8 == 0, "W must be a multiple of 8 (sublane tile)"

    # Largest row tile <= row_tile that divides H.
    tile_h = max(1, min(row_tile, H))
    while H % tile_h:
        tile_h -= 1
    n_tiles = H // tile_h
    wp = W + 2

    # ---- glue (plain JAX): BN fold into w1, casts, 1-px pad, halo row tiles
    scale = (gamma / jnp.sqrt(run_var + eps)).astype(jnp.float32)
    shift = (beta - run_mean * scale).astype(jnp.float32)
    shift2d = shift.reshape(1, Cmid)

    # Fold BN scale into the 3x3 weights in f32, then cast to bf16.
    w1f = w1_hwio.astype(jnp.float32) * scale[None, None, None, :]
    w1f = w1f.astype(jnp.bfloat16).reshape(9, Cin, Cmid)   # tap index = dy*3+dx
    w2b = w2.astype(jnp.bfloat16)
    b2f = b2.astype(jnp.float32).reshape(1, Ncls)

    xb = x_nhwc.astype(jnp.bfloat16)
    xpad = jnp.pad(xb, ((0, 0), (1, 1), (1, 1), (0, 0)))   # (N, H+2, W+2, Cin)
    # Overlapping row tiles with a 1-row halo on each side:
    # (N, n_tiles, tile_h+2, W+2, Cin)  -- only ~(tile_h+2)/tile_h inflation.
    tiles = jnp.stack(
        [xpad[:, t * tile_h:t * tile_h + tile_h + 2] for t in range(n_tiles)],
        axis=1)

    out_itemsize = jnp.dtype(out_dtype).itemsize
    flops = 2 * N * H * W * (9 * Cin * Cmid + Cmid * Ncls)
    bytes_accessed = (tiles.size * 2 + w1f.size * 2 + w2b.size * 2 +
                      (shift2d.size + b2f.size) * 4 +
                      N * H * W * Ncls * out_itemsize)

    in_tile_bytes = (tile_h + 2) * wp * Cin * 2
    out_tile_bytes = tile_h * W * Ncls * out_itemsize
    weight_bytes = (w1f.size + w2b.size) * 2 + (shift2d.size + b2f.size) * 4
    step_bytes = 2 * (in_tile_bytes + out_tile_bytes) + 2 * weight_bytes + (4 << 20)

    out = pl.pallas_call(
        seghead_kernel,
        out_shape=jax.ShapeDtypeStruct((N, H, W, Ncls), out_dtype),
        grid_spec=pltpu.PrefetchScalarGridSpec(
            num_scalar_prefetch=0,
            grid=(N, n_tiles),
            in_specs=[
                pl.BlockSpec((1, 1, tile_h + 2, wp, Cin),
                             lambda n, t: (n, t, 0, 0, 0)),
                pl.BlockSpec((9, Cin, Cmid), lambda n, t: (0, 0, 0)),
                pl.BlockSpec((1, Cmid), lambda n, t: (0, 0)),
                pl.BlockSpec((Cmid, Ncls), lambda n, t: (0, 0)),
                pl.BlockSpec((1, Ncls), lambda n, t: (0, 0)),
            ],
            out_specs=pl.BlockSpec((1, tile_h, W, Ncls),
                                   lambda n, t: (n, t, 0, 0)),
        ),
        compiler_params=pltpu.CompilerParams(
            dimension_semantics=("parallel", "parallel"),
            vmem_limit_bytes=_vmem_limit_bytes(step_bytes)),
        cost_estimate=pl.CostEstimate(flops=flops, transcendentals=0,
                                      bytes_accessed=bytes_accessed),
    )(tiles, w1f, shift2d, w2b, b2f)
    return out


def seghead_reference(x_nhwc, w1_hwio, gamma, beta, run_mean, run_var, w2, b2,
                      eps=1e-5):
    """Pure-JAX f32 reference (same math, lax conv)."""
    y = jax.lax.conv_general_dilated(
        x_nhwc, w1_hwio, window_strides=(1, 1), padding="SAME",
        dimension_numbers=("NHWC", "HWIO", "NHWC"))
    scale = gamma / jnp.sqrt(run_var + eps)
    shift = beta - run_mean * scale
    y = y * scale[None, None, None, :] + shift[None, None, None, :]
    y = jnp.maximum(y, 0.0)
    y = jnp.einsum("nhwc,cd->nhwd", y, w2) + b2[None, None, None, :]
    return y


if __name__ == "__main__":
    # Small shapes consistent with SegHead(in_chan=4, mid_chan=8, n_classes=3).
    N, Cin, H, W = 2, 4, 16, 16
    Cmid, Ncls = 8, 3

    key = jax.random.PRNGKey(0)
    k = jax.random.split(key, 8)
    x_nchw = jax.random.normal(k[0], (N, Cin, H, W), jnp.float32)
    w1_oihw = jax.random.normal(k[1], (Cmid, Cin, 3, 3), jnp.float32) * 0.1
    gamma = jax.random.uniform(k[2], (Cmid,), jnp.float32, 0.5, 1.5)
    beta = jax.random.normal(k[3], (Cmid,), jnp.float32) * 0.1
    run_mean = jax.random.normal(k[4], (Cmid,), jnp.float32) * 0.1
    run_var = jax.random.uniform(k[5], (Cmid,), jnp.float32, 0.5, 1.5)
    w2_oi = jax.random.normal(k[6], (Ncls, Cmid), jnp.float32) * 0.1
    b2 = jax.random.normal(k[7], (Ncls,), jnp.float32) * 0.1

    # Convert PyTorch layouts -> kernel layouts.
    x_nhwc = jnp.transpose(x_nchw, (0, 2, 3, 1))          # NCHW -> NHWC
    w1_hwio = jnp.transpose(w1_oihw, (2, 3, 1, 0))        # OIHW -> HWIO
    w2 = jnp.transpose(w2_oi, (1, 0))                     # (Ncls,Cmid) -> (Cmid,Ncls)

    out = seghead_forward(x_nhwc, w1_hwio, gamma, beta, run_mean, run_var, w2, b2)
    out = jax.block_until_ready(out)

    ref = seghead_reference(x_nhwc, w1_hwio, gamma, beta, run_mean, run_var, w2, b2)
    ref = jax.block_until_ready(ref)

    assert out.shape == (N, H, W, Ncls), out.shape
    # bf16 MXU inputs + bf16 logit store vs pure-f32 reference -> loose tol.
    out_f32 = out.astype(jnp.float32)
    max_err = float(jnp.max(jnp.abs(out_f32 - ref)))
    assert jnp.allclose(out_f32, ref, atol=5e-2, rtol=5e-2), max_err
    print("KERNEL_OK")
</pallas_src>

<mosaic_0001>
module attributes {stable_mosaic.version = 11 : i64} {
  func.func @seghead_kernel(%arg0: i32, %arg1: i32, %arg2: memref<1x1x18x18x4xbf16, #tpu.memory_space<vmem>>, %arg3: memref<9x4x8xbf16, #tpu.memory_space<vmem>>, %arg4: memref<1x8xf32, #tpu.memory_space<vmem>>, %arg5: memref<8x3xbf16, #tpu.memory_space<vmem>>, %arg6: memref<1x3xf32, #tpu.memory_space<vmem>>, %arg7: memref<1x16x16x3xbf16, #tpu.memory_space<vmem>>) attributes {dimension_semantics = [#tpu.dimension_semantics<parallel>, #tpu.dimension_semantics<parallel>], iteration_bounds = array<i64: 2, 1>, scalar_prefetch = 0 : i64, scratch_operands = 0 : i64, tpu.core_type = #tpu.core_type<tc>, window_params = [{transform_indices = @transform_0, window_bounds = array<i64: 1, 1, 18, 18, 4>}, {pipeline_mode = #tpu.pipeline_mode<synchronous>, transform_indices = @transform_1, window_bounds = array<i64: 9, 4, 8>}, {pipeline_mode = #tpu.pipeline_mode<synchronous>, transform_indices = @transform_2, window_bounds = array<i64: 1, 8>}, {pipeline_mode = #tpu.pipeline_mode<synchronous>, transform_indices = @transform_3, window_bounds = array<i64: 8, 3>}, {pipeline_mode = #tpu.pipeline_mode<synchronous>, transform_indices = @transform_4, window_bounds = array<i64: 1, 3>}, {transform_indices = @transform_5, window_bounds = array<i64: 1, 16, 16, 3>}]} {
    %c0 = arith.constant 0 : index
    %c0_0 = arith.constant 0 : index
    %c0_1 = arith.constant 0 : index
    %c0_2 = arith.constant 0 : index
    %c0_3 = arith.constant 0 : index
    %0 = vector.load %arg2[%c0, %c0_0, %c0_1, %c0_2, %c0_3] : memref<1x1x18x18x4xbf16, #tpu.memory_space<vmem>>, vector<1x1x18x18x4xbf16>
    %1 = vector.shape_cast %0 : vector<1x1x18x18x4xbf16> to vector<18x18x4xbf16>
    %cst = arith.constant 0.000000e+00 : f32
    %2 = vector.broadcast %cst : f32 to vector<256x8xf32>
    %3 = vector.extract_strided_slice %1 {offsets = [0, 0, 0], sizes = [16, 16, 4], strides = [1, 1, 1]} : vector<18x18x4xbf16> to vector<16x16x4xbf16>
    %4 = vector.shape_cast %3 : vector<16x16x4xbf16> to vector<256x4xbf16>
    %c0_4 = arith.constant 0 : index
    %c0_5 = arith.constant 0 : index
    %c0_6 = arith.constant 0 : index
    %5 = vector.load %arg3[%c0_4, %c0_5, %c0_6] : memref<9x4x8xbf16, #tpu.memory_space<vmem>>, vector<1x4x8xbf16>
    %6 = vector.shape_cast %5 : vector<1x4x8xbf16> to vector<4x8xbf16>
    %cst_7 = arith.constant dense<0.000000e+00> : vector<256x8xf32>
    %7 = tpu.matmul %4, %6, %cst_7 {dimension_numbers = #tpu.dot_dimension_numbers<[1], [0], [0], [1], [0, 0, 1, 1], [], []>} : vector<256x4xbf16>, vector<4x8xbf16>, vector<256x8xf32> -> vector<256x8xf32>
    %8 = arith.addf %2, %7 : vector<256x8xf32>
    %9 = vector.extract_strided_slice %1 {offsets = [0, 1, 0], sizes = [16, 16, 4], strides = [1, 1, 1]} : vector<18x18x4xbf16> to vector<16x16x4xbf16>
    %10 = vector.shape_cast %9 : vector<16x16x4xbf16> to vector<256x4xbf16>
    %c1 = arith.constant 1 : index
    %c0_8 = arith.constant 0 : index
    %c0_9 = arith.constant 0 : index
    %11 = vector.load %arg3[%c1, %c0_8, %c0_9] : memref<9x4x8xbf16, #tpu.memory_space<vmem>>, vector<1x4x8xbf16>
    %12 = vector.shape_cast %11 : vector<1x4x8xbf16> to vector<4x8xbf16>
    %cst_10 = arith.constant dense<0.000000e+00> : vector<256x8xf32>
    %13 = tpu.matmul %10, %12, %cst_10 {dimension_numbers = #tpu.dot_dimension_numbers<[1], [0], [0], [1], [0, 0, 1, 1], [], []>} : vector<256x4xbf16>, vector<4x8xbf16>, vector<256x8xf32> -> vector<256x8xf32>
    %14 = arith.addf %8, %13 : vector<256x8xf32>
    %15 = vector.extract_strided_slice %1 {offsets = [0, 2, 0], sizes = [16, 16, 4], strides = [1, 1, 1]} : vector<18x18x4xbf16> to vector<16x16x4xbf16>
    %16 = vector.shape_cast %15 : vector<16x16x4xbf16> to vector<256x4xbf16>
    %c2 = arith.constant 2 : index
    %c0_11 = arith.constant 0 : index
    %c0_12 = arith.constant 0 : index
    %17 = vector.load %arg3[%c2, %c0_11, %c0_12] : memref<9x4x8xbf16, #tpu.memory_space<vmem>>, vector<1x4x8xbf16>
    %18 = vector.shape_cast %17 : vector<1x4x8xbf16> to vector<4x8xbf16>
    %cst_13 = arith.constant dense<0.000000e+00> : vector<256x8xf32>
    %19 = tpu.matmul %16, %18, %cst_13 {dimension_numbers = #tpu.dot_dimension_numbers<[1], [0], [0], [1], [0, 0, 1, 1], [], []>} : vector<256x4xbf16>, vector<4x8xbf16>, vector<256x8xf32> -> vector<256x8xf32>
    %20 = arith.addf %14, %19 : vector<256x8xf32>
    %21 = vector.extract_strided_slice %1 {offsets = [1, 0, 0], sizes = [16, 16, 4], strides = [1, 1, 1]} : vector<18x18x4xbf16> to vector<16x16x4xbf16>
    %22 = vector.shape_cast %21 : vector<16x16x4xbf16> to vector<256x4xbf16>
    %c3 = arith.constant 3 : index
    %c0_14 = arith.constant 0 : index
    %c0_15 = arith.constant 0 : index
    %23 = vector.load %arg3[%c3, %c0_14, %c0_15] : memref<9x4x8xbf16, #tpu.memory_space<vmem>>, vector<1x4x8xbf16>
    %24 = vector.shape_cast %23 : vector<1x4x8xbf16> to vector<4x8xbf16>
    %cst_16 = arith.constant dense<0.000000e+00> : vector<256x8xf32>
    %25 = tpu.matmul %22, %24, %cst_16 {dimension_numbers = #tpu.dot_dimension_numbers<[1], [0], [0], [1], [0, 0, 1, 1], [], []>} : vector<256x4xbf16>, vector<4x8xbf16>, vector<256x8xf32> -> vector<256x8xf32>
    %26 = arith.addf %20, %25 : vector<256x8xf32>
    %27 = vector.extract_strided_slice %1 {offsets = [1, 1, 0], sizes = [16, 16, 4], strides = [1, 1, 1]} : vector<18x18x4xbf16> to vector<16x16x4xbf16>
    %28 = vector.shape_cast %27 : vector<16x16x4xbf16> to vector<256x4xbf16>
    %c4 = arith.constant 4 : index
    %c0_17 = arith.constant 0 : index
    %c0_18 = arith.constant 0 : index
    %29 = vector.load %arg3[%c4, %c0_17, %c0_18] : memref<9x4x8xbf16, #tpu.memory_space<vmem>>, vector<1x4x8xbf16>
    %30 = vector.shape_cast %29 : vector<1x4x8xbf16> to vector<4x8xbf16>
    %cst_19 = arith.constant dense<0.000000e+00> : vector<256x8xf32>
    %31 = tpu.matmul %28, %30, %cst_19 {dimension_numbers = #tpu.dot_dimension_numbers<[1], [0], [0], [1], [0, 0, 1, 1], [], []>} : vector<256x4xbf16>, vector<4x8xbf16>, vector<256x8xf32> -> vector<256x8xf32>
    %32 = arith.addf %26, %31 : vector<256x8xf32>
    %33 = vector.extract_strided_slice %1 {offsets = [1, 2, 0], sizes = [16, 16, 4], strides = [1, 1, 1]} : vector<18x18x4xbf16> to vector<16x16x4xbf16>
    %34 = vector.shape_cast %33 : vector<16x16x4xbf16> to vector<256x4xbf16>
    %c5 = arith.constant 5 : index
    %c0_20 = arith.constant 0 : index
    %c0_21 = arith.constant 0 : index
    %35 = vector.load %arg3[%c5, %c0_20, %c0_21] : memref<9x4x8xbf16, #tpu.memory_space<vmem>>, vector<1x4x8xbf16>
    %36 = vector.shape_cast %35 : vector<1x4x8xbf16> to vector<4x8xbf16>
    %cst_22 = arith.constant dense<0.000000e+00> : vector<256x8xf32>
    %37 = tpu.matmul %34, %36, %cst_22 {dimension_numbers = #tpu.dot_dimension_numbers<[1], [0], [0], [1], [0, 0, 1, 1], [], []>} : vector<256x4xbf16>, vector<4x8xbf16>, vector<256x8xf32> -> vector<256x8xf32>
    %38 = arith.addf %32, %37 : vector<256x8xf32>
    %39 = vector.extract_strided_slice %1 {offsets = [2, 0, 0], sizes = [16, 16, 4], strides = [1, 1, 1]} : vector<18x18x4xbf16> to vector<16x16x4xbf16>
    %40 = vector.shape_cast %39 : vector<16x16x4xbf16> to vector<256x4xbf16>
    %c6 = arith.constant 6 : index
    %c0_23 = arith.constant 0 : index
    %c0_24 = arith.constant 0 : index
    %41 = vector.load %arg3[%c6, %c0_23, %c0_24] : memref<9x4x8xbf16, #tpu.memory_space<vmem>>, vector<1x4x8xbf16>
    %42 = vector.shape_cast %41 : vector<1x4x8xbf16> to vector<4x8xbf16>
    %cst_25 = arith.constant dense<0.000000e+00> : vector<256x8xf32>
    %43 = tpu.matmul %40, %42, %cst_25 {dimension_numbers = #tpu.dot_dimension_numbers<[1], [0], [0], [1], [0, 0, 1, 1], [], []>} : vector<256x4xbf16>, vector<4x8xbf16>, vector<256x8xf32> -> vector<256x8xf32>
    %44 = arith.addf %38, %43 : vector<256x8xf32>
    %45 = vector.extract_strided_slice %1 {offsets = [2, 1, 0], sizes = [16, 16, 4], strides = [1, 1, 1]} : vector<18x18x4xbf16> to vector<16x16x4xbf16>
    %46 = vector.shape_cast %45 : vector<16x16x4xbf16> to vector<256x4xbf16>
    %c7 = arith.constant 7 : index
    %c0_26 = arith.constant 0 : index
    %c0_27 = arith.constant 0 : index
    %47 = vector.load %arg3[%c7, %c0_26, %c0_27] : memref<9x4x8xbf16, #tpu.memory_space<vmem>>, vector<1x4x8xbf16>
    %48 = vector.shape_cast %47 : vector<1x4x8xbf16> to vector<4x8xbf16>
    %cst_28 = arith.constant dense<0.000000e+00> : vector<256x8xf32>
    %49 = tpu.matmul %46, %48, %cst_28 {dimension_numbers = #tpu.dot_dimension_numbers<[1], [0], [0], [1], [0, 0, 1, 1], [], []>} : vector<256x4xbf16>, vector<4x8xbf16>, vector<256x8xf32> -> vector<256x8xf32>
    %50 = arith.addf %44, %49 : vector<256x8xf32>
    %51 = vector.extract_strided_slice %1 {offsets = [2, 2, 0], sizes = [16, 16, 4], strides = [1, 1, 1]} : vector<18x18x4xbf16> to vector<16x16x4xbf16>
    %52 = vector.shape_cast %51 : vector<16x16x4xbf16> to vector<256x4xbf16>
    %c8 = arith.constant 8 : index
    %c0_29 = arith.constant 0 : index
    %c0_30 = arith.constant 0 : index
    %53 = vector.load %arg3[%c8, %c0_29, %c0_30] : memref<9x4x8xbf16, #tpu.memory_space<vmem>>, vector<1x4x8xbf16>
    %54 = vector.shape_cast %53 : vector<1x4x8xbf16> to vector<4x8xbf16>
    %cst_31 = arith.constant dense<0.000000e+00> : vector<256x8xf32>
    %55 = tpu.matmul %52, %54, %cst_31 {dimension_numbers = #tpu.dot_dimension_numbers<[1], [0], [0], [1], [0, 0, 1, 1], [], []>} : vector<256x4xbf16>, vector<4x8xbf16>, vector<256x8xf32> -> vector<256x8xf32>
    %56 = arith.addf %50, %55 : vector<256x8xf32>
    %c0_32 = arith.constant 0 : index
    %c0_33 = arith.constant 0 : index
    %57 = vector.load %arg4[%c0_32, %c0_33] : memref<1x8xf32, #tpu.memory_space<vmem>>, vector<1x8xf32>
    %58 = vector.broadcast %57 : vector<1x8xf32> to vector<256x8xf32>
    %59 = arith.addf %56, %58 : vector<256x8xf32>
    %cst_34 = arith.constant 0.000000e+00 : f32
    %60 = vector.broadcast %cst_34 : f32 to vector<256x8xf32>
    %61 = arith.maximumf %59, %60 : vector<256x8xf32>
    %62 = arith.truncf %61 : vector<256x8xf32> to vector<256x8xbf16>
    %c0_35 = arith.constant 0 : index
    %c0_36 = arith.constant 0 : index
    %63 = vector.load %arg5[%c0_35, %c0_36] : memref<8x3xbf16, #tpu.memory_space<vmem>>, vector<8x3xbf16>
    %cst_37 = arith.constant dense<0.000000e+00> : vector<256x3xf32>
    %64 = tpu.matmul %62, %63, %cst_37 {dimension_numbers = #tpu.dot_dimension_numbers<[1], [0], [0], [1], [0, 0, 1, 1], [], []>} : vector<256x8xbf16>, vector<8x3xbf16>, vector<256x3xf32> -> vector<256x3xf32>
    %c0_38 = arith.constant 0 : index
    %c0_39 = arith.constant 0 : index
    %65 = vector.load %arg6[%c0_38, %c0_39] : memref<1x3xf32, #tpu.memory_space<vmem>>, vector<1x3xf32>
    %66 = vector.broadcast %65 : vector<1x3xf32> to vector<256x3xf32>
    %67 = arith.addf %64, %66 : vector<256x3xf32>
    %68 = vector.shape_cast %67 : vector<256x3xf32> to vector<16x16x3xf32>
    %69 = arith.truncf %68 : vector<16x16x3xf32> to vector<16x16x3xbf16>
    %c0_40 = arith.constant 0 : index
    %c0_41 = arith.constant 0 : index
    %c0_42 = arith.constant 0 : index
    %c0_43 = arith.constant 0 : index
    %70 = vector.load %arg7[%c0_40, %c0_41, %c0_42, %c0_43] : memref<1x16x16x3xbf16, #tpu.memory_space<vmem>>, vector<1x16x16x3xbf16>
    %71 = vector.shape_cast %70 : vector<1x16x16x3xbf16> to vector<16x16x3xbf16>
    %72 = vector.shape_cast %69 : vector<16x16x3xbf16> to vector<1x16x16x3xbf16>
    tpu.vector_store %arg7[%c0_40, %c0_41, %c0_42, %c0_43], %72 {strides = array<i32>} : memref<1x16x16x3xbf16, #tpu.memory_space<vmem>>, vector<1x16x16x3xbf16>,
    return
  }
  func.func @transform_0(%arg0: i32, %arg1: i32) -> (i32, i32, i32, i32, i32) {
    %c0_i32 = arith.constant 0 : i32
    %c0_i32_0 = arith.constant 0 : i32
    %c0_i32_1 = arith.constant 0 : i32
    %c0_i32_2 = arith.constant 0 : i32
    return %arg0, %arg1, %c0_i32, %c0_i32_0, %c0_i32_1 : i32, i32, i32, i32, i32
  }
  func.func @transform_1(%arg0: i32, %arg1: i32) -> (i32, i32, i32) {
    %c0_i32 = arith.constant 0 : i32
    %c0_i32_0 = arith.constant 0 : i32
    %c0_i32_1 = arith.constant 0 : i32
    %c0_i32_2 = arith.constant 0 : i32
    return %c0_i32, %c0_i32_0, %c0_i32_1 : i32, i32, i32
  }
  func.func @transform_2(%arg0: i32, %arg1: i32) -> (i32, i32) {
    %c0_i32 = arith.constant 0 : i32
    %c0_i32_0 = arith.constant 0 : i32
    %c0_i32_1 = arith.constant 0 : i32
    return %c0_i32, %c0_i32_0 : i32, i32
  }
  func.func @transform_3(%arg0: i32, %arg1: i32) -> (i32, i32) {
    %c0_i32 = arith.constant 0 : i32
    %c0_i32_0 = arith.constant 0 : i32
    %c0_i32_1 = arith.constant 0 : i32
    return %c0_i32, %c0_i32_0 : i32, i32
  }
  func.func @transform_4(%arg0: i32, %arg1: i32) -> (i32, i32) {
    %c0_i32 = arith.constant 0 : i32
    %c0_i32_0 = arith.constant 0 : i32
    %c0_i32_1 = arith.constant 0 : i32
    return %c0_i32, %c0_i32_0 : i32, i32
  }
  func.func @transform_5(%arg0: i32, %arg1: i32) -> (i32, i32, i32, i32) {
    %c0_i32 = arith.constant 0 : i32
    %c0_i32_0 = arith.constant 0 : i32
    %c0_i32_1 = arith.constant 0 : i32
    return %arg0, %arg1, %c0_i32, %c0_i32_0 : i32, i32, i32, i32
  }
}

</mosaic_0001>

<bundles_post_ra>
// kernel: seghead_forward.1
= control target key start
LH: loop header
LB: loop body
LE: loop exit
PB: predicated region body
PF: predicated region fallthrough
CT: control target
= control target key end

     0   :  { %s4739_s18 = smov 0   ;;  %s4741_s19 = smov 0   ;;  %s5951_s0 = inlined_call_operand.vmem [shape: bf16[2,1,18,18,4], index: 0, kind: input, shape index: {}]   ;;  %s5952_s1 = inlined_call_operand.vmem [shape: bf16[9,4,8], index: 1, kind: input, shape index: {}]   ;;  %s5953_s2 = inlined_call_operand.vmem [shape: f32[1,8], index: 2, kind: input, shape index: {}]   ;;  %s5954_s3 = inlined_call_operand.vmem [shape: bf16[8,3], index: 3, kind: input, shape index: {}]   ;;  %s5955_s4 = inlined_call_operand.vmem [shape: f32[1,3], index: 4, kind: input, shape index: {}]   ;;  %s5956_s5 = inlined_call_operand.vmem [shape: bf16[2,16,16,3], index: 5, kind: output, shape index: {}]  }
   0x1   :  { %s4743_s20 = smov 0  }
   0x2 LB: > { %s27_s21 = sadd.s32 1, %s4703_s19  ;;  %p3550_p0 = scmp.ge.s32.totalorder %s4707_s20, 1  ;;  %s4707_s20 = sphi %s4743_s20, %s15_s20   ;;  %s4703_s19 = sphi %s4741_s19, %s6047_s19   ;;  %s4699_s18 = sphi %s4739_s18, %s6046_s18  }
   0x3   : > { %p29_p1 = scmp.ge.s32.totalorder %s27_s21, 2  ;;  %p207_p2 = scmp.lt.s32.totalorder %s4707_s20, 3 }
   0x5   : > { %s6049_s21 = smov (%p29_p1, %s27_s21), 0  ;;  %p208_p3 = pnand %p3550_p0, %p207_p2 }
   0x7   : > { %211 = sbr.rel (%p208_p3) target bundleno = 802 (0x322), region = 40 }
   0xe   : > { %vm806_vm0 = vcmask 1041408   ;;  %v3686_v0 = vld [vmem:[%s5952_s1 + $0x8] sm:$0x3]  ;;  %v3554_v1 = vld [vmem:[%s5952_s1 + $0x2] sm:$0x3]  ;;  %p244_p4 = scmp.lt.s32.totalorder %s4699_s18, 1 }
   0xf   : > { %4633 = vmatprep.subr.msk.bf16.mxu0 %vm806_vm0, %v3686_v0  ;;  %4629 = vmatprep.subr.msk.bf16.mxu1 %vm806_vm0, %v3554_v1  ;;  %v1927_v2 = vsel %vm806_vm0, %v3686_v0, 0  ;;  %v808_v3 = vsel %vm806_vm0, %v3554_v1, 0  ;;  %v3705_v4 = vld [vmem:[%s5952_s1 + $0xa] sm:$0x3]  ;;  %v319_v5 = vld [vmem:[%s5952_s1] sm:$0x3] }
  0x10   : > { %4170 = vmatpush3.bf16.msra.mxu0 %v1927_v2  ;;  %4034 = vmatpush3.bf16.msra.mxu1 %v808_v3  ;;  %s6051_s18 = smov (!%p244_p4, %s4699_s18), 1  ;;  %vm320_vm1 = vsmask.f32 3328  ;;  %vm321_vm2 = vsmask.f32 7440  ;;  %v4784_v6 = vsel %vm806_vm0, %v3705_v4, 0 }
  0x11   : > { %4634 = vmatprep.subr.msk.bf16.mxu0 %vm806_vm0, %v3705_v4  ;;  %4630 = vmatprep.subr.msk.bf16.mxu1 %vm806_vm0, %v319_v5  ;;  %s4639_s30 = smul.u32 216, %s6051_s18  ;;  %v4787_v7 = vsel %vm806_vm0, %v319_v5, 0  ;;  %v4792_v8 = vld [vmem:[%s5952_s1 + $0xc] sm:$0x3]  ;;  %vm757_vm3 = vcmask 31744   ;;  %vm4830_vm4 = vmor %vm320_vm1, %vm321_vm2  ;;  %vm1279_vm5 = vcmask 1042432  }
  0x12   : > { %v4818_v21 = vsel %vm806_vm0, %v4792_v8, 0  ;;  %vm1280_vm6 = vcmask 1046532   ;;  %v3067_v35 = vld [vmem:[%s5954_s3] sm:$0xf]  ;;  %vm3124_vm8 = vcmask 1043456   ;;  %vm3075_vm9 = vcmask 64512  }
  0x13   : > { %s4781_s8 = scalar_lea.vmem %s5951_s0, %s4639_s30  ;;  %vm5198_vm7 = vmor %vm1279_vm5, %vm1280_vm6  ;;  %s3830_s29 = sshll.u32 %s6051_s18, 7  ;;  %vm3417_vm10 = vcmask 19456  }
  0x14   : > { %v4795_v9 = vld [vmem:[%s4781_s8] sm:$0xf]  ;;  %v4798_v10 = vld [vmem:[%s4781_s8 + $0x4] sm:$0xf]  ;;  %v267_v11 = vld [vmem:[%s4781_s8 + $0x8] sm:$0x1]  ;;  %s5845_s7 = scalar_lea.vmem %s5956_s5, %s3830_s29 }
  0x15   : > { %v324_v12 = vshrl.u32 %v4795_v9, 16  ;;  %v327_v13 = vshll.u32 %v4795_v9, 16  ;;  %v333_v14 = vshll.u32 %v4798_v10, 16  ;;  %v337_v15 = vshrl.u32 %v4798_v10, 16  ;;  %v4806_v16 = vld [vmem:[%s4781_s8 + $0xc] sm:$0xf] }
  0x16   : > { %v343_v17 = vshll.u32 %v267_v11, 16  ;;  %v4809_v18 = vld [vmem:[%s4781_s8 + $0x10] sm:$0xf]  ;;  %v4812_v19 = vld [vmem:[%s4781_s8 + $0x14] sm:$0x1]  ;;  %v348_v27 = vshrl.u32 %v4806_v16, 16 }
  0x17   : > { %v326_v22 = vrot.slane %v324_v12, 4  ;;  %v329_v23 = vrot.slane %v327_v13, 5  ;;  %v335_v24 = vrot.slane %v333_v14, 5  ;;  %v339_v25 = vrot.slane %v337_v15, 4  ;;  %v4826_v34 = vld [vmem:[%s4781_s8 + $0x18] sm:$0xf] }
  0x18   : > { %v345_v26 = vrot.slane %v343_v17, 5  ;;  %v351_v28 = vshll.u32 %v4806_v16, 16  ;;  %v357_v29 = vshll.u32 %v4809_v18, 16  ;;  %v361_v32 = vshrl.u32 %v4809_v18, 16  ;;  %v4839_v40 = vld [vmem:[%s4781_s8 + $0x1c] sm:$0xf] }
  0x19   : > { %v330_v30 = vor.u32 %v329_v23, %v326_v22  ;;  %v340_v31 = vor.u32 %v339_v25, %v335_v24  ;;  %v367_v33 = vshll.u32 %v4812_v19, 16  ;;  %v350_v36 = vrot.slane %v348_v27, 4  ;;  %v4843_v47 = vld [vmem:[%s4781_s8 + $0x20] sm:$0x1]  ;;  %v4853_v58 = vld [vmem:[%s4781_s8 + $0x24] sm:$0xf] }
  0x1a   : > { %v353_v37 = vrot.slane %v351_v28, 5  ;;  %v359_v38 = vrot.slane %v357_v29, 5  ;;  %v4836_v39 = vcombine.low %v4806_v16, %v4809_v18  ;;  %v363_v43 = vrot.slane %v361_v32, 4  ;;  %v4858_v63 = vld [vmem:[%s4781_s8 + $0x28] sm:$0xf] }
  0x1b   : > { %v331_v41 = vrot.slane %v330_v30, 4  ;;  %v341_v42 = vrot.slane %v340_v31, 4  ;;  %v369_v44 = vrot.slane %v367_v33, 5  ;;  %v372_v48 = vshrl.u32 %v4826_v34, 16  ;;  %v4866_v4 = vld [vmem:[%s4781_s8 + $0x2c] sm:$0x1] }
  0x1c   : > { %v354_v45 = vor.u32 %v353_v37, %v350_v36  ;;  %v375_v49 = vshll.u32 %v4826_v34, 16  ;;  %v364_v52 = vor.u32 %v363_v43, %v359_v38  ;;  %v381_v53 = vshll.u32 %v4839_v40, 16  ;;  %v4872_v14 = vld [vmem:[%s4781_s8 + $0x30] sm:$0xf]  ;;  %v4879_v28 = vld [vmem:[%s4781_s8 + $0x34] sm:$0xf] }
  0x1d   : > { %v336_v50 = vsel %vm4830_vm4, %v331_v41, %v335_v24  ;;  %v346_v51 = vsel %vm4830_vm4, %v341_v42, %v345_v26  ;;  %v374_v56 = vrot.slane %v372_v48, 4  ;;  %v385_v61 = vshrl.u32 %v4839_v40, 16  ;;  %v4886_v32 = vld [vmem:[%s4781_s8 + $0x38] sm:$0x1]  ;;  %v4894_v48 = vld [vmem:[%s4781_s8 + $0x3c] sm:$0xf] }
  0x1e   : > { %v3555_v54 = vcombine.low %v336_v50, %v346_v51  ;;  %v355_v55 = vrot.slane %v354_v45, 4  ;;  %v377_v57 = vrot.slane %v375_v49, 5  ;;  %v365_v59 = vrot.slane %v364_v52, 4  ;;  %v5037_v20 = vld [vmem:[%s4781_s8 + $0x80] sm:$0x1] }
  0x1f   : > { %v383_v60 = vrot.slane %v381_v53, 5  ;;  %v391_v62 = vshll.u32 %v4843_v47, 16  ;;  %v387_v11 = vrot.slane %v385_v61, 4  ;;  %v396_v13 = vshrl.u32 %v4853_v58, 16  ;;  %v4900_v53 = vld [vmem:[%s4781_s8 + $0x40] sm:$0xf] }
  0x20   : > { %4035 = vmatprep.mubr.msk.bf16.mxu1 %vm757_vm3, %v3555_v54  ;;  %v360_v0 = vsel %vm4830_vm4, %v355_v55, %v359_v38  ;;  %v378_v1 = vor.u32 %v377_v57, %v374_v56  ;;  %v370_v5 = vsel %vm4830_vm4, %v365_v59, %v369_v44  ;;  %v399_v22 = vshll.u32 %v4853_v58, 16 }
  0x21   : > { %v393_v12 = vrot.slane %v391_v62, 5  ;;  %v3556_v15 = vcombine.low %v360_v0, %v370_v5  ;;  %v405_v23 = vshll.u32 %v4858_v63, 16  ;;  %v388_v24 = vor.u32 %v387_v11, %v383_v60 }
  0x22   : > { %v379_v17 = vrot.slane %v378_v1, 4  ;;  %v398_v25 = vrot.slane %v396_v13, 4  ;;  %v409_v26 = vshrl.u32 %v4858_v63, 16  ;;  %v415_v27 = vshll.u32 %v4866_v4, 16  ;;  %v4912_v1 = vld [vmem:[%s4781_s8 + $0x44] sm:$0x1] }
  0x23   : > { %4171 = vmatprep.mubr.msk.bf16.mxu0 %vm757_vm3, %v3556_v15  ;;  %4036 = vmatmul.mubr.msk.bf16.vlgmr.msra.gmra.mrb[0].mxu1 %vm757_vm3, %v3556_v15  ;;  %v401_v30 = vrot.slane %v399_v22, 5  ;;  %v407_v31 = vrot.slane %v405_v23, 5  ;;  %v420_v33 = vshrl.u32 %v4872_v14, 16  ;;  %v389_v36 = vrot.slane %v388_v24, 4  ;;  %v4924_v23 = vld [vmem:[%s4781_s8 + $0x4c] sm:$0xf] }
  0x24   : > { %v384_v29 = vsel %vm4830_vm4, %v379_v17, %v383_v60  ;;  %v411_v37 = vrot.slane %v409_v26, 4  ;;  %v417_v38 = vrot.slane %v415_v27, 5  ;;  %v423_v41 = vshll.u32 %v4872_v14, 16  ;;  %4068 = vmatpush3.bf16.msra.mxu1 %v4787_v7 }
  0x25   : > { %v402_v42 = vor.u32 %v401_v30, %v398_v25  ;;  %v422_v43 = vrot.slane %v420_v33, 4  ;;  %v429_v44 = vshll.u32 %v4879_v28, 16  ;;  %v433_v45 = vshrl.u32 %v4879_v28, 16 }
  0x26   : > { %v394_v49 = vsel %vm4830_vm4, %v389_v36, %v393_v12  ;;  %v412_v50 = vor.u32 %v411_v37, %v407_v31  ;;  %v425_v51 = vrot.slane %v423_v41, 5  ;;  %v439_v52 = vshll.u32 %v4886_v32, 16  ;;  %v4917_v12 = vld [vmem:[%s4781_s8 + $0x48] sm:$0xf]  ;;  %v4946_v41 = vld [vmem:[%s4781_s8 + $0x54] sm:$0xf] }
  0x27   : > { %v4902_v7 = vcombine.low %v384_v29, %v394_v49  ;;  %v403_v54 = vrot.slane %v402_v42, 4  ;;  %v431_v55 = vrot.slane %v429_v44, 5  ;;  %v435_v56 = vrot.slane %v433_v45, 4  ;;  %v4951_v49 = vld [vmem:[%s4781_s8 + $0x58] sm:$0xf] }
  0x28   : > { %v413_v57 = vrot.slane %v412_v50, 4  ;;  %v426_v59 = vor.u32 %v425_v51, %v422_v43  ;;  %v441_v60 = vrot.slane %v439_v52, 5  ;;  %v444_v61 = vshrl.u32 %v4894_v48, 16 }
  0x29   : > { %5991 = vst [vmem:[#allocation2_spill] sm:$0xff] %v4902_v7  ;;  %4172 = vmatmul.mubr.msk.bf16.vlgmr.msra.gmra.mrb[0].mxu0 %vm757_vm3, %v4902_v7  ;;  %4039 = vmatprep.mubr.msk.bf16.mxu1 %vm757_vm3, %v4902_v7  ;;  %v408_v62 = vsel %vm4830_vm4, %v403_v54, %v407_v31  ;;  %v436_v0 = vor.u32 %v435_v56, %v431_v55  ;;  %v447_v5 = vshll.u32 %v4894_v48, 16  ;;  %v453_v11 = vshll.u32 %v4900_v53, 16 }
  0x2a   : > { %4204 = vmatpush3.bf16.msra.mxu0 %v4784_v6  ;;  %v418_v13 = vsel %vm4830_vm4, %v413_v57, %v417_v38  ;;  %v427_v15 = vrot.slane %v426_v59, 4  ;;  %v446_v17 = vrot.slane %v444_v61, 4  ;;  %v457_v22 = vshrl.u32 %v4900_v53, 16 }
  0x2b   : > { %v4926_v24 = vcombine.low %v408_v62, %v418_v13  ;;  %v437_v25 = vrot.slane %v436_v0, 4  ;;  %v449_v26 = vrot.slane %v447_v5, 5  ;;  %v455_v27 = vrot.slane %v453_v11, 5  ;;  %4635 = vmatprep.subr.msk.bf16.mxu0 %vm806_vm0, %v4792_v8  ;;  %v4941_v8 = vld [vmem:[%s4781_s8 + $0x50] sm:$0x1] }
  0x2c   : > { %v432_v6 = vsel %vm4830_vm4, %v427_v15, %v431_v55  ;;  %v459_v29 = vrot.slane %v457_v22, 4  ;;  %v463_v30 = vshll.u32 %v4912_v1, 16  ;;  %v468_v31 = vshrl.u32 %v4917_v12, 16  ;;  %v4964_v0 = vld [vmem:[%s4781_s8 + $0x5c] sm:$0x1] }
  0x2d   : > { %5992 = vst [vmem:[#allocation3_spill] sm:$0xff] %v4926_v24  ;;  %4175 = vmatprep.mubr.msk.bf16.mxu0 %vm757_vm3, %v4926_v24  ;;  %4040 = vmatmul.mubr.msk.bf16.gmra.mrb[4].mxu1 %vm757_vm3, %v4926_v24  ;;  %v442_v33 = vsel %vm4830_vm4, %v437_v25, %v441_v60  ;;  %v450_v36 = vor.u32 %v449_v26, %v446_v17  ;;  %v471_v37 = vshll.u32 %v4917_v12, 16  ;;  %v477_v38 = vshll.u32 %v4924_v23, 16  ;;  %v4968_v11 = vld [vmem:[%s4781_s8 + $0x60] sm:$0xf] }
  0x2e   : > { %v4948_v42 = vcombine.low %v432_v6, %v442_v33  ;;  %v460_v43 = vor.u32 %v459_v29, %v455_v27  ;;  %v465_v44 = vrot.slane %v463_v30, 5  ;;  %v470_v45 = vrot.slane %v468_v31, 4  ;;  %v4973_v25 = vld [vmem:[%s4781_s8 + $0x64] sm:$0xf] }
  0x2f   : > { %v451_v50 = vrot.slane %v450_v36, 4  ;;  %v473_v51 = vrot.slane %v471_v37, 5  ;;  %v479_v52 = vrot.slane %v477_v38, 5  ;;  %v481_v54 = vshrl.u32 %v4924_v23, 16 }
  0x30   : > { %5993 = vst [vmem:[#allocation4_spill] sm:$0xff] %v4948_v42  ;;  %4043 = vmatprep.mubr.msk.bf16.mxu1 %vm757_vm3, %v4948_v42  ;;  %v461_v55 = vrot.slane %v460_v43, 4  ;;  %v487_v56 = vshll.u32 %v4941_v8, 16  ;;  %v492_v57 = vshrl.u32 %v4946_v41, 16  ;;  %v495_v59 = vshll.u32 %v4946_v41, 16 }
  0x31   : > { %4176 = vmatmul.mubr.msk.bf16.gmra.mrb[4].mxu0 %vm757_vm3, %v4948_v42  ;;  %v456_v60 = vsel %vm4830_vm4, %v451_v50, %v455_v27  ;;  %v474_v61 = vor.u32 %v473_v51, %v470_v45  ;;  %v483_v62 = vrot.slane %v481_v54, 4  ;;  %v501_v5 = vshll.u32 %v4951_v49, 16  ;;  %v4987_v43 = vld [vmem:[%s4781_s8 + $0x68] sm:$0x1] }
  0x32   : > { %v466_v13 = vsel %vm4830_vm4, %v461_v55, %v465_v44  ;;  %v489_v15 = vrot.slane %v487_v56, 5  ;;  %v494_v17 = vrot.slane %v492_v57, 4  ;;  %v497_v22 = vrot.slane %v495_v59, 5  ;;  %v4992_v56 = vld [vmem:[%s4781_s8 + $0x6c] sm:$0xf] }
  0x33   : > { %v4975_v26 = vcombine.low %v456_v60, %v466_v13  ;;  %v475_v27 = vrot.slane %v474_v61, 4  ;;  %v484_v6 = vor.u32 %v483_v62, %v479_v52  ;;  %v503_v29 = vrot.slane %v501_v5, 5  ;;  %v4998_v61 = vld [vmem:[%s4781_s8 + $0x70] sm:$0xf] }
  0x34   : > { %v498_v30 = vor.u32 %v497_v22, %v494_v17  ;;  %v505_v31 = vshrl.u32 %v4951_v49, 16  ;;  %v511_v33 = vshll.u32 %v4964_v0, 16  ;;  %v516_v36 = vshrl.u32 %v4968_v11, 16  ;;  %v5006_v22 = vld [vmem:[%s4781_s8 + $0x74] sm:$0x1] }
  0x35   : > { %5994 = vst [vmem:[#allocation5_spill] sm:$0xff] %v4975_v26  ;;  %4179 = vmatprep.mubr.msk.bf16.mxu0 %vm757_vm3, %v4975_v26  ;;  %4044 = vmatmul.mubr.msk.bf16.gmra.mrb[8].mxu1 %vm757_vm3, %v4975_v26  ;;  %v480_v37 = vsel %vm4830_vm4, %v475_v27, %v479_v52  ;;  %v485_v38 = vrot.slane %v484_v6, 4  ;;  %v519_v44 = vshll.u32 %v4968_v11, 16  ;;  %v525_v45 = vshll.u32 %v4973_v25, 16 }
  0x36   : > { %v499_v50 = vrot.slane %v498_v30, 4  ;;  %v507_v51 = vrot.slane %v505_v31, 4  ;;  %v513_v54 = vrot.slane %v511_v33, 5  ;;  %v518_v55 = vrot.slane %v516_v36, 4  ;;  %v5013_v31 = vld [vmem:[%s5952_s1 + $0x4] sm:$0x3] }
  0x37   : > { %v490_v57 = vsel %vm4830_vm4, %v485_v38, %v489_v15  ;;  %v521_v59 = vrot.slane %v519_v44, 5  ;;  %v527_v60 = vrot.slane %v525_v45, 5  ;;  %v529_v52 = vshrl.u32 %v4973_v25, 16  ;;  %5996 = vst [vmem:[#allocation7_spill] sm:$0xff] %v5013_v31  ;;  %4631 = vmatprep.subr.msk.bf16.mxu1 %vm806_vm0, %v5013_v31  ;;  %v5119_v31 = vld [vmem:[%s4781_s8 + $0xa8] sm:$0xf] }
  0x38   : > { %v5000_v62 = vcombine.low %v480_v37, %v490_v57  ;;  %v504_v5 = vsel %vm4830_vm4, %v499_v50, %v503_v29  ;;  %v508_v13 = vor.u32 %v507_v51, %v503_v29  ;;  %v535_v17 = vshll.u32 %v4987_v43, 16  ;;  %v5022_v51 = vld [vmem:[%s4781_s8 + $0x78] sm:$0xf]  ;;  %6006 = vst [vmem:[#allocation17_spill] sm:$0xff] %v5119_v31 }
  0x39   : > { %v522_v27 = vor.u32 %v521_v59, %v518_v55  ;;  %v531_v6 = vrot.slane %v529_v52, 4  ;;  %v540_v15 = vshrl.u32 %v4992_v56, 16  ;;  %v543_v30 = vshll.u32 %v4992_v56, 16 }
  0x3a   : > { %5995 = vst [vmem:[#allocation6_spill] sm:$0xff] %v5000_v62  ;;  %4180 = vmatmul.mubr.msk.bf16.gmra.mrb[8].mxu0 %vm757_vm3, %v5000_v62  ;;  %4047 = vmatprep.mubr.msk.bf16.mxu1 %vm757_vm3, %v5000_v62  ;;  %v509_v29 = vrot.slane %v508_v13, 4  ;;  %v537_v33 = vrot.slane %v535_v17, 5  ;;  %v549_v36 = vshll.u32 %v4998_v61, 16  ;;  %v553_v37 = vshrl.u32 %v4998_v61, 16 }
  0x3b   : > { %v523_v38 = vrot.slane %v522_v27, 4  ;;  %v532_v44 = vor.u32 %v531_v6, %v527_v60  ;;  %v542_v45 = vrot.slane %v540_v15, 4  ;;  %v545_v50 = vrot.slane %v543_v30, 5  ;;  %v5030_v13 = vld [vmem:[%s4781_s8 + $0x7c] sm:$0xf] }
  0x3c   : > { %v514_v55 = vsel %vm4830_vm4, %v509_v29, %v513_v54  ;;  %v551_v57 = vrot.slane %v549_v36, 5  ;;  %v555_v59 = vrot.slane %v553_v37, 4  ;;  %v559_v52 = vshll.u32 %v5006_v22, 16  ;;  %v5092_v62 = vld [vmem:[%s4781_s8 + $0x9c] sm:$0xf] }
  0x3d   : > { %v5032_v17 = vcombine.low %v504_v5, %v514_v55  ;;  %v528_v27 = vsel %vm4830_vm4, %v523_v38, %v527_v60  ;;  %v533_v6 = vrot.slane %v532_v44, 4  ;;  %v546_v15 = vor.u32 %v545_v50, %v542_v45  ;;  %v5050_v38 = vld [vmem:[%s4781_s8 + $0x84] sm:$0xf]  ;;  %6003 = vst [vmem:[#allocation14_spill] sm:$0xff] %v5092_v62 }
  0x3e   : > { %v556_v30 = vor.u32 %v555_v59, %v551_v57  ;;  %v561_v3 = vrot.slane %v559_v52, 5  ;;  %v564_v54 = vshrl.u32 %v5022_v51, 16  ;;  %v567_v29 = vshll.u32 %v5022_v51, 16  ;;  %v5055_v59 = vld [vmem:[%s4781_s8 + $0x88] sm:$0xf] }
  0x3f   : > { %5997 = vst [vmem:[#allocation8_spill] sm:$0xff] %v5032_v17  ;;  %4183 = vmatprep.mubr.msk.bf16.mxu0 %vm757_vm3, %v5032_v17  ;;  %4048 = vmatmul.mubr.msk.bf16.gmra.mrb[12].mxu1 %vm757_vm3, %v5032_v17  ;;  %v538_v60 = vsel %vm4830_vm4, %v533_v6, %v537_v33  ;;  %v547_v5 = vrot.slane %v546_v15, 4  ;;  %v573_v36 = vshll.u32 %v5030_v13, 16  ;;  %v577_v37 = vshrl.u32 %v5030_v13, 16 }
  0x40   : > { %v5052_v44 = vcombine.low %v528_v27, %v538_v60  ;;  %v557_v45 = vrot.slane %v556_v30, 4  ;;  %v566_v50 = vrot.slane %v564_v54, 4  ;;  %v569_v55 = vrot.slane %v567_v29, 5  ;;  %v5067_v54 = vld [vmem:[%s4781_s8 + $0x8c] sm:$0x1] }
  0x41   : > { %v552_v52 = vsel %vm4830_vm4, %v547_v5, %v551_v57  ;;  %v575_v33 = vrot.slane %v573_v36, 5  ;;  %v579_v6 = vrot.slane %v577_v37, 4  ;;  %v583_v15 = vshll.u32 %v5037_v20, 16  ;;  %v5072_v60 = vld [vmem:[%s4781_s8 + $0x90] sm:$0xf] }
  0x42   : > { %5998 = vst [vmem:[#allocation9_spill] sm:$0xff] %v5052_v44  ;;  %4184 = vmatmul.mubr.msk.bf16.gmra.mrb[12].mxu0 %vm757_vm3, %v5052_v44  ;;  %4051 = vmatprep.mubr.msk.bf16.mxu1 %vm757_vm3, %v5052_v44  ;;  %v562_v27 = vsel %vm4830_vm4, %v557_v45, %v561_v3  ;;  %v570_v30 = vor.u32 %v569_v55, %v566_v50  ;;  %v588_v29 = vshrl.u32 %v5050_v38, 16  ;;  %v591_v57 = vshll.u32 %v5050_v38, 16  ;;  %v5079_v50 = vld [vmem:[%s4781_s8 + $0x94] sm:$0xf] }
  0x43   : > { %5999 = vst [vmem:[#allocation10_spill] sm:$0xff] %v5072_v60  ;;  %v5074_v5 = vcombine.low %v552_v52, %v562_v27  ;;  %v580_v36 = vor.u32 %v579_v6, %v575_v33  ;;  %v585_v37 = vrot.slane %v583_v15, 5  ;;  %v597_v46 = vshll.u32 %v5055_v59, 16  ;;  %6001 = vst [vmem:[#allocation12_spill] sm:$0xff] %v5079_v50 }
  0x44   : > { %v571_v2 = vrot.slane %v570_v30, 4  ;;  %v590_v44 = vrot.slane %v588_v29, 4  ;;  %v593_v3 = vrot.slane %v591_v57, 5  ;;  %v601_v45 = vshrl.u32 %v5055_v59, 16  ;;  %v5088_v29 = vld [vmem:[%s4781_s8 + $0x98] sm:$0x1] }
  0x45   : > { %6000 = vst [vmem:[#allocation11_spill] sm:$0xff] %v5074_v5  ;;  %4187 = vmatprep.mubr.msk.bf16.mxu0 %vm757_vm3, %v5074_v5  ;;  %v581_v55 = vrot.slane %v580_v36, 4  ;;  %v599_v17 = vrot.slane %v597_v46, 5  ;;  %v607_v52 = vshll.u32 %v5067_v54, 16  ;;  %v612_v6 = vshrl.u32 %v5072_v60, 16  ;;  %6002 = vst [vmem:[#allocation13_spill] sm:$0xff] %v5088_v29 }
  0x46   : > { %v576_v15 = vsel %vm4830_vm4, %v571_v2, %v575_v33  ;;  %v594_v27 = vor.u32 %v593_v3, %v590_v44  ;;  %v603_v30 = vrot.slane %v601_v45, 4  ;;  %v615_v57 = vshll.u32 %v5072_v60, 16  ;;  %v5102_v45 = vld [vmem:[%s4781_s8 + $0xa0] sm:$0xf]  ;;  %v5133_v60 = vld [vmem:[%s4781_s8 + $0xb0] sm:$0x1] }
  0x47   : > { %4052 = vmatmul.mubr.msk.bf16.gmra.mrb[16].mxu1 %vm757_vm3, %v5074_v5  ;;  %v586_v46 = vsel %vm4830_vm4, %v581_v55, %v585_v37  ;;  %v609_v36 = vrot.slane %v607_v52, 5  ;;  %v614_v26 = vrot.slane %v612_v6, 4  ;;  %v621_v42 = vshll.u32 %v5079_v50, 16 }
  0x48   : > { %v5099_v2 = vcombine.low %v576_v15, %v586_v46  ;;  %v595_v44 = vrot.slane %v594_v27, 4  ;;  %v604_v33 = vor.u32 %v603_v30, %v599_v17  ;;  %v617_v3 = vrot.slane %v615_v57, 5  ;;  %v5114_v15 = vld [vmem:[%s4781_s8 + $0xa4] sm:$0x1] }
  0x49   : > { %v623_v24 = vrot.slane %v621_v42, 5  ;;  %v625_v7 = vshrl.u32 %v5079_v50, 16  ;;  %v631_v5 = vshll.u32 %v5088_v29, 16  ;;  %v636_v37 = vshrl.u32 %v5092_v62, 16  ;;  %6005 = vst [vmem:[#allocation16_spill] sm:$0xff] %v5114_v15 }
  0x4a   : > { %6004 = vst [vmem:[#allocation15_spill] sm:$0xff] %v5099_v2  ;;  %4188 = vmatmul.mubr.msk.bf16.gmra.mrb[16].mxu0 %vm757_vm3, %v5099_v2  ;;  %4055 = vmatprep.mubr.msk.bf16.mxu1 %vm757_vm3, %v5099_v2  ;;  %v600_v55 = vsel %vm4830_vm4, %v595_v44, %v599_v17  ;;  %v605_v52 = vrot.slane %v604_v33, 4  ;;  %v618_v6 = vor.u32 %v617_v3, %v614_v26  ;;  %v639_v42 = vshll.u32 %v5092_v62, 16  ;;  %v5125_v26 = vld [vmem:[%s4781_s8 + $0xac] sm:$0xf] }
  0x4b   : > { %v627_v27 = vrot.slane %v625_v7, 4  ;;  %v633_v30 = vrot.slane %v631_v5, 5  ;;  %v638_v57 = vrot.slane %v636_v37, 4  ;;  %v645_v46 = vshll.u32 %v5102_v45, 16  ;;  %6007 = vst [vmem:[#allocation18_spill] sm:$0xff] %v5125_v26 }
  0x4c   : > { %v610_v2 = vsel %vm4830_vm4, %v605_v52, %v609_v36  ;;  %v619_v29 = vrot.slane %v618_v6, 4  ;;  %v641_v50 = vrot.slane %v639_v42, 5  ;;  %v649_v17 = vshrl.u32 %v5102_v45, 16 }
  0x4d   : > { %v5127_v44 = vcombine.low %v600_v55, %v610_v2  ;;  %v628_v33 = vor.u32 %v627_v27, %v623_v24  ;;  %v647_v7 = vrot.slane %v645_v46, 5  ;;  %v655_v5 = vshll.u32 %v5114_v15, 16  ;;  %v5144_v27 = vld [vmem:[%s4781_s8 + $0xb4] sm:$0xf]  ;;  %v5157_v15 = vld [vmem:[%s4781_s8 + $0xbc] sm:$0x1] }
  0x4e   : > { %v624_v3 = vsel %vm4830_vm4, %v619_v29, %v623_v24  ;;  %v642_v37 = vor.u32 %v641_v50, %v638_v57  ;;  %v651_v62 = vrot.slane %v649_v17, 4  ;;  %v660_v36 = vshrl.u32 %v5119_v31, 16  ;;  %6009 = vst [vmem:[#allocation20_spill] sm:$0xff] %v5144_v27  ;;  %6012 = vst [vmem:[#allocation23_spill] sm:$0xff] %v5157_v15 }
  0x4f   : > { %6008 = vst [vmem:[#allocation19_spill] sm:$0xff] %v5127_v44  ;;  %4191 = vmatprep.mubr.msk.bf16.mxu0 %vm757_vm3, %v5127_v44  ;;  %4056 = vmatmul.mubr.msk.bf16.gmra.mrb[20].mxu1 %vm757_vm3, %v5127_v44  ;;  %v629_v2 = vrot.slane %v628_v33, 4  ;;  %v657_v55 = vrot.slane %v655_v5, 5  ;;  %v663_v52 = vshll.u32 %v5119_v31, 16  ;;  %v669_v24 = vshll.u32 %v5125_v26, 16 }
  0x50   : > { %v643_v50 = vrot.slane %v642_v37, 4  ;;  %v652_v29 = vor.u32 %v651_v62, %v647_v7  ;;  %v662_v6 = vrot.slane %v660_v36, 4  ;;  %v673_v42 = vshrl.u32 %v5125_v26, 16  ;;  %v5150_v5 = vld [vmem:[%s4781_s8 + $0xb8] sm:$0xf] }
  0x51   : > { %v634_v57 = vsel %vm4830_vm4, %v629_v2, %v633_v30  ;;  %v665_v46 = vrot.slane %v663_v52, 5  ;;  %v671_v17 = vrot.slane %v669_v24, 5  ;;  %v679_v33 = vshll.u32 %v5133_v60, 16  ;;  %6010 = vst [vmem:[#allocation21_spill] sm:$0xff] %v5150_v5 }
  0x52   : > { %v5152_v44 = vcombine.low %v624_v3, %v634_v57  ;;  %v648_v62 = vsel %vm4830_vm4, %v643_v50, %v647_v7  ;;  %v653_v37 = vrot.slane %v652_v29, 4  ;;  %v675_v36 = vrot.slane %v673_v42, 4  ;;  %v5170_v50 = vld [vmem:[%s4781_s8 + $0xc0] sm:$0xf] }
  0x53   : > { %v666_v26 = vor.u32 %v665_v46, %v662_v6  ;;  %v681_v31 = vrot.slane %v679_v33, 5  ;;  %v684_v30 = vshrl.u32 %v5144_v27, 16  ;;  %v687_v2 = vshll.u32 %v5144_v27, 16  ;;  %6013 = vst [vmem:[#allocation24_spill] sm:$0xff] %v5170_v50  ;;  %v5175_v46 = vld [vmem:[%s4781_s8 + $0xc4] sm:$0xf] }
  0x54   : > { %6011 = vst [vmem:[#allocation22_spill] sm:$0xff] %v5152_v44  ;;  %4192 = vmatmul.mubr.msk.bf16.gmra.mrb[20].mxu0 %vm757_vm3, %v5152_v44  ;;  %4059 = vmatprep.mubr.msk.bf16.mxu1 %vm757_vm3, %v5152_v44  ;;  %v658_v7 = vsel %vm4830_vm4, %v653_v37, %v657_v55  ;;  %v676_v3 = vor.u32 %v675_v36, %v671_v17  ;;  %v693_v52 = vshll.u32 %v5150_v5, 16  ;;  %v697_v24 = vshrl.u32 %v5150_v5, 16 }
  0x55   : > { %v5172_v29 = vcombine.low %v648_v62, %v658_v7  ;;  %v667_v6 = vrot.slane %v666_v26, 4  ;;  %v686_v42 = vrot.slane %v684_v30, 4  ;;  %v689_v57 = vrot.slane %v687_v2, 5  ;;  %v5185_v26 = vld [vmem:[%s4781_s8 + $0xc8] sm:$0x1] }
  0x56   : > { %v677_v33 = vrot.slane %v676_v3, 4  ;;  %v695_v44 = vrot.slane %v693_v52, 5  ;;  %v699_v27 = vrot.slane %v697_v24, 4  ;;  %v703_v55 = vshll.u32 %v5157_v15, 16 }
  0x57   : > { %6014 = vst [vmem:[#allocation25_spill] sm:$0xff] %v5172_v29  ;;  %4195 = vmatprep.mubr.msk.bf16.mxu0 %vm757_vm3, %v5172_v29  ;;  %4060 = vmatmul.mubr.msk.bf16.gmra.mrb[24].mxu1 %vm757_vm3, %v5172_v29  ;;  %v672_v62 = vsel %vm4830_vm4, %v667_v6, %v671_v17  ;;  %v690_v37 = vor.u32 %v689_v57, %v686_v42  ;;  %v1895_v36 = vshrl.u32 %v5170_v50, 16  ;;  %v1898_v30 = vshll.u32 %v5170_v50, 16 }
  0x58   : > { %v682_v2 = vsel %vm4830_vm4, %v677_v33, %v681_v31  ;;  %v700_v7 = vor.u32 %v699_v27, %v695_v44  ;;  %v705_v3 = vrot.slane %v703_v55, 5  ;;  %v1904_v52 = vshll.u32 %v5175_v46, 16 }
  0x59   : > { %v5192_v24 = vcombine.low %v672_v62, %v682_v2  ;;  %v691_v29 = vrot.slane %v690_v37, 4  ;;  %v1897_v15 = vrot.slane %v1895_v36, 4  ;;  %v1900_v5 = vrot.slane %v1898_v30, 5 }
  0x5a   : > { %v701_v17 = vrot.slane %v700_v7, 4  ;;  %v1906_v6 = vrot.slane %v1904_v52, 5  ;;  %v1908_v42 = vshrl.u32 %v5175_v46, 16  ;;  %v1914_v57 = vshll.u32 %v5185_v26, 16 }
  0x5b   : > { %4063 = vmatprep.mubr.msk.bf16.mxu1 %vm757_vm3, %v5192_v24  ;;  %v696_v31 = vsel %vm4830_vm4, %v691_v29, %v695_v44  ;;  %v1901_v27 = vor.u32 %v1900_v5, %v1897_v15  ;;  %v3620_v33 = vrot.slane %v4806_v16, 9  ;;  %v1291_v55 = vrot.slane %v4809_v18, 5 }
  0x5c   : > { %4196 = vmatmul.mubr.msk.bf16.gmra.mrb[24].mxu0 %vm757_vm3, %v5192_v24  ;;  %v706_v62 = vsel %vm4830_vm4, %v701_v17, %v705_v3  ;;  %v1910_v37 = vrot.slane %v1908_v42, 4  ;;  %v1916_v36 = vrot.slane %v1914_v57, 5  ;;  %v3621_v30 = vrot.slane %v4826_v34, 9 }
  0x5d   : > { %v5213_v2 = vcombine.low %v696_v31, %v706_v62  ;;  %v1902_v7 = vrot.slane %v1901_v27, 4  ;;  %v1292_v15 = vsel %vm5198_vm7, %v3620_v33, %v1291_v55  ;;  %v1293_v44 = vrot.slane %v1291_v55, 4 }
  0x5e   : > { %v1911_v16 = vor.u32 %v1910_v37, %v1906_v6  ;;  %v6017_v18 = vrot.slane %v4839_v40, 5  ;;  %v5225_v52 = vcombine.low %v4826_v34, %v4839_v40  ;;  %v6019_v42 = vrot.slane %v4812_v19, 5 }
  0x5f   : > { %4199 = vmatprep.mubr.msk.bf16.mxu0 %vm757_vm3, %v5213_v2  ;;  %4064 = vmatmul.mubr.msk.bf16.gmra.mrb[28].mxu1 %vm757_vm3, %v5213_v2  ;;  %v1907_v17 = vsel %vm4830_vm4, %v1902_v7, %v1906_v6  ;;  %v3622_v31 = vrot.slane %v4853_v58, 9  ;;  %v1305_v27 = vrot.slane %v4858_v63, 5  ;;  %v6020_v40 = vcombine.low %v4795_v9, %v4798_v10 }
  0x60   : > { %v1299_v5 = vsel %vm5198_vm7, %v3621_v30, %v6017_v18  ;;  %v6018_v29 = vmov %v6017_v18  ;;  %v1295_v57 = vsel %vm5198_vm7, %v1293_v44, %v6019_v42  ;;  %v1912_v34 = vrot.slane %v1911_v16, 4 }
  0x61   : > { %v1300_v3 = vrot.slane %v6018_v29, 4  ;;  %4069 = vmatprep.mubr.msk.bf16.mxu1 %vm757_vm3, %v6020_v40  ;;  %v5243_v33 = vcombine.low %v1292_v15, %v1295_v57  ;;  %v6021_v55 = vrot.slane %v4843_v47, 5  ;;  %v1308_v6 = vrot.slane %v4866_v4, 5 }
  0x62   : > { %v1306_v37 = vsel %vm5198_vm7, %v3622_v31, %v1305_v27  ;;  %v1307_v30 = vrot.slane %v1305_v27, 4  ;;  %v5256_v9 = vcombine.low %v4853_v58, %v4858_v63  ;;  %v1917_v10 = vsel %vm4830_vm4, %v1912_v34, %v1916_v36 }
  0x63   : > { %v1302_v19 = vsel %vm5198_vm7, %v1300_v3, %v6021_v55  ;;  %v3623_v47 = vrot.slane %v4872_v14, 9  ;;  %v1312_v7 = vrot.slane %v4879_v28, 5  ;;  %v1315_v15 = vrot.slane %v4886_v32, 5 }
  0x64   : > { %v5250_v62 = vcombine.low %v1299_v5, %v1302_v19  ;;  %v5263_v4 = vcombine.low %v1907_v17, %v1917_v10  ;;  %v1309_v44 = vsel %vm5198_vm7, %v1307_v30, %v1308_v6  ;;  %v5269_v16 = vcombine.low %v4872_v14, %v4879_v28 }
  0x65   : > { %v3624_v58 = vrot.slane %v4894_v48, 9  ;;  %v5272_v63 = vcombine.low %v1306_v37, %v1309_v44  ;;  %v1313_v36 = vsel %vm5198_vm7, %v3623_v47, %v1312_v7  ;;  %v1314_v18 = vrot.slane %v1312_v7, 4 }
  0x66   : > { %v1319_v5 = vrot.slane %v4900_v53, 5  ;;  %4200 = vmatmul.mubr.msk.bf16.gmra.mrb[28].mxu0 %vm757_vm3, %v5263_v4  ;;  %v1322_v32 = vrot.slane %v4912_v1, 5  ;;  %v5282_v29 = vcombine.low %v4894_v48, %v4900_v53  ;;  %v3625_v14 = vrot.slane %v4917_v12, 9 }
  0x67   : > { %v1326_v28 = vrot.slane %v4924_v23, 5  ;;  %4205 = vmatprep.mubr.msk.bf16.mxu0 %vm757_vm3, %v5243_v33  ;;  %v1316_v3 = vsel %vm5198_vm7, %v1314_v18, %v1315_v15  ;;  %v1329_v1 = vrot.slane %v4941_v8, 5  ;;  %4070 = vmatmul.mubr.msk.bf16.vlgmr.msra.gmra.mrb[0].mxu1 %vm757_vm3, %v4836_v39  ;;  %v5301_v31 = vcombine.low %v4917_v12, %v4924_v23 }
  0x68   : > { %v1320_v17 = vsel %vm5198_vm7, %v3624_v58, %v1319_v5  ;;  %v1321_v42 = vrot.slane %v1319_v5, 4  ;;  %v5295_v48 = vcombine.low %v1313_v36, %v1316_v3  ;;  %4073 = vmatprep.mubr.msk.bf16.mxu1 %vm757_vm3, %v5225_v52  ;;  %v3626_v8 = vrot.slane %v4946_v41, 9 }
  0x69   : > { %v1327_v53 = vsel %vm5198_vm7, %v3625_v14, %v1326_v28  ;;  %v1328_v57 = vrot.slane %v1326_v28, 4  ;;  %v1333_v34 = vrot.slane %v4951_v49, 5  ;;  %v1336_v40 = vrot.slane %v4964_v0, 5 }
  0x6a   : > { %v1323_v27 = vsel %vm5198_vm7, %v1321_v42, %v1322_v32  ;;  %v5316_v12 = vcombine.low %v4946_v41, %v4951_v49  ;;  %v3627_v23 = vrot.slane %v4968_v11, 9  ;;  %v1340_v10 = vrot.slane %v4973_v25, 5 }
  0x6b   : > { %v5310_v55 = vcombine.low %v1320_v17, %v1323_v27  ;;  %v1330_v19 = vsel %vm5198_vm7, %v1328_v57, %v1329_v1  ;;  %v1334_v37 = vsel %vm5198_vm7, %v3626_v8, %v1333_v34  ;;  %v1335_v30 = vrot.slane %v1333_v34, 4  ;;  %v6023_v57 = vld [vmem:[#allocation12_spill] sm:$0xff] }
  0x6c   : > { %v5319_v6 = vcombine.low %v1327_v53, %v1330_v19  ;;  %v1343_v0 = vrot.slane %v4987_v43, 5  ;;  %v5327_v47 = vcombine.low %v4968_v11, %v4973_v25  ;;  %v3628_v7 = vrot.slane %v4992_v56, 9  ;;  %v5339_v43 = vld [vmem:[%s5952_s1 + $0xe] sm:$0x3]  ;;  %v6024_v19 = vld [vmem:[#allocation13_spill] sm:$0xff] }
  0x6d   : > { %v1347_v41 = vrot.slane %v4998_v61, 5  ;;  %v1337_v49 = vsel %vm5198_vm7, %v1335_v30, %v1336_v40  ;;  %v1341_v15 = vsel %vm5198_vm7, %v3627_v23, %v1340_v10  ;;  %v1342_v44 = vrot.slane %v1340_v10, 4  ;;  %v6025_v10 = vld [vmem:[#allocation14_spill] sm:$0xff] }
  0x6e   : > { %v1350_v58 = vrot.slane %v5006_v22, 5  ;;  %4206 = vmatmul.mubr.msk.bf16.vlgmr.msra.gmra.mrb[0].mxu0 %vm757_vm3, %v5250_v62  ;;  %v5343_v11 = vcombine.low %v1334_v37, %v1337_v49  ;;  %v5349_v18 = vcombine.low %v4992_v56, %v4998_v61  ;;  %v3629_v5 = vrot.slane %v5022_v51, 9 }
  0x6f   : > { %v1348_v25 = vsel %vm5198_vm7, %v3628_v7, %v1347_v41  ;;  %v1349_v36 = vrot.slane %v1347_v41, 4  ;;  %4238 = vmatpush3.bf16.msra.mxu0 %v4818_v21  ;;  %4209 = vmatprep.mubr.msk.bf16.mxu0 %vm757_vm3, %v5272_v63  ;;  %v1344_v22 = vsel %vm5198_vm7, %v1342_v44, %v1343_v0  ;;  %v1354_v32 = vrot.slane %v5030_v13, 5  ;;  %v6026_v41 = vld [vmem:[#allocation16_spill] sm:$0xff] }
  0x70   : > { %v1357_v14 = vrot.slane %v5037_v20, 5  ;;  %4074 = vmatmul.mubr.msk.bf16.gmra.mrb[4].mxu1 %vm757_vm3, %v5256_v9  ;;  %v5361_v28 = vcombine.low %v1341_v15, %v1344_v22  ;;  %v5367_v56 = vcombine.low %v5022_v51, %v5030_v13  ;;  %v3630_v61 = vrot.slane %v5050_v38, 9  ;;  %4636 = vmatprep.subr.msk.bf16.mxu0 %vm806_vm0, %v5339_v43  ;;  %v6022_v13 = vld [vmem:[#allocation10_spill] sm:$0xff] }
  0x71   : > { %v1351_v21 = vsel %vm5198_vm7, %v1349_v36, %v1350_v58  ;;  %4077 = vmatprep.mubr.msk.bf16.mxu1 %vm757_vm3, %v5269_v16  ;;  %v1355_v3 = vsel %vm5198_vm7, %v3629_v5, %v1354_v32  ;;  %v1356_v17 = vrot.slane %v1354_v32, 4  ;;  %v1361_v42 = vrot.slane %v5055_v59, 5 }
  0x72   : > { %v5374_v20 = vcombine.low %v1348_v25, %v1351_v21  ;;  %v1364_v1 = vrot.slane %v5067_v54, 5  ;;  %v5382_v51 = vcombine.low %v5050_v38, %v5055_v59  ;;  %v3631_v53 = vrot.slane %v6022_v13, 9  ;;  %v6027_v25 = vld [vmem:[#allocation17_spill] sm:$0xff] }
  0x73   : > { %v1368_v27 = vrot.slane %v6023_v57, 5  ;;  %v1358_v8 = vsel %vm5198_vm7, %v1356_v17, %v1357_v14  ;;  %v1362_v34 = vsel %vm5198_vm7, %v3630_v61, %v1361_v42  ;;  %v1363_v40 = vrot.slane %v1361_v42, 4  ;;  %v6028_v14 = vld [vmem:[#allocation18_spill] sm:$0xff]  ;;  %v6030_v42 = vld [vmem:[#allocation21_spill] sm:$0xff] }
  0x74   : > { %v1371_v23 = vrot.slane %v6024_v19, 5  ;;  %v5391_v37 = vcombine.low %v1355_v3, %v1358_v8  ;;  %v5397_v59 = vcombine.low %v6022_v13, %v6023_v57  ;;  %v3632_v0 = vrot.slane %v6025_v10, 9  ;;  %v6029_v3 = vld [vmem:[#allocation20_spill] sm:$0xff] }
  0x75   : > { %v1369_v54 = vsel %vm5198_vm7, %v3631_v53, %v1368_v27  ;;  %v1370_v38 = vrot.slane %v1368_v27, 4  ;;  %v1365_v30 = vsel %vm5198_vm7, %v1363_v40, %v1364_v1  ;;  %v1375_v7 = vrot.slane %v5102_v45, 5  ;;  %v6031_v27 = vld [vmem:[#allocation23_spill] sm:$0xff] }
  0x76   : > { %v1378_v49 = vrot.slane %v6026_v41, 5  ;;  %4210 = vmatmul.mubr.msk.bf16.gmra.mrb[4].mxu0 %vm757_vm3, %v5295_v48  ;;  %v5406_v15 = vcombine.low %v1362_v34, %v1365_v30  ;;  %v5412_v58 = vcombine.low %v6025_v10, %v5102_v45  ;;  %v3633_v36 = vrot.slane %v6027_v25, 9 }
  0x77   : > { %v1372_v44 = vsel %vm5198_vm7, %v1370_v38, %v1371_v23  ;;  %4213 = vmatprep.mubr.msk.bf16.mxu0 %vm757_vm3, %v5310_v55  ;;  %v1376_v5 = vsel %vm5198_vm7, %v3632_v0, %v1375_v7  ;;  %v1377_v32 = vrot.slane %v1375_v7, 4  ;;  %v1382_v21 = vrot.slane %v6028_v14, 5  ;;  %v3668_v0 = vld [vmem:[%s5952_s1 + $0x6] sm:$0x3] }
  0x78   : > { %v5417_v22 = vcombine.low %v1369_v54, %v1372_v44  ;;  %4078 = vmatmul.mubr.msk.bf16.gmra.mrb[8].mxu1 %vm757_vm3, %v5282_v29  ;;  %v1385_v61 = vrot.slane %v5133_v60, 5  ;;  %v5427_v45 = vcombine.low %v6027_v25, %v6028_v14  ;;  %v3634_v17 = vrot.slane %v6029_v3, 9  ;;  %v6032_v54 = vld [vmem:[#allocation24_spill] sm:$0xff] }
  0x79   : > { %v1389_v1 = vrot.slane %v6030_v42, 5  ;;  %4081 = vmatprep.mubr.msk.bf16.mxu1 %vm757_vm3, %v5301_v31  ;;  %v1379_v13 = vsel %vm5198_vm7, %v1377_v32, %v1378_v49  ;;  %v1383_v53 = vsel %vm5198_vm7, %v3633_v36, %v1382_v21  ;;  %v1384_v57 = vrot.slane %v1382_v21, 4  ;;  %v6033_v49 = vld [vmem:[#allocation7_spill] sm:$0xff] }
  0x7a   : > { %v1392_v60 = vrot.slane %v6031_v27, 5  ;;  %v5438_v8 = vcombine.low %v1376_v5, %v1379_v13  ;;  %v5444_v19 = vcombine.low %v6029_v3, %v6030_v42  ;;  %v3704_v38 = vrot.slane %v6032_v54, 9 }
  0x7b   : > { %v1390_v34 = vsel %vm5198_vm7, %v3634_v17, %v1389_v1  ;;  %v1391_v40 = vrot.slane %v1389_v1, 4  ;;  %v1386_v23 = vsel %vm5198_vm7, %v1384_v57, %v1385_v61  ;;  %v2125_v30 = vrot.slane %v5175_v46, 5  ;;  %v4683_v61 = vld [vmem:[%s4781_s8 + $0x8] sm:$0x1]  ;;  %v4684_v17 = vld [vmem:[%s4781_s8] sm:$0xf] }
  0x7c   : > { %v2128_v10 = vrot.slane %v5185_v26, 5  ;;  %v5454_v7 = vcombine.low %v1383_v53, %v1386_v23  ;;  %v1493_v44 = vsel %vm806_vm0, %v6033_v49, 0  ;;  %v5468_v26 = vcombine.low %v6032_v54, %v5175_v46  ;;  %v4682_v46 = vld [vmem:[%s4781_s8 + $0x4] sm:$0xf] }
  0x7d   : > { %v1393_v41 = vsel %vm5198_vm7, %v1391_v40, %v1392_v60  ;;  %v2126_v36 = vsel %vm5198_vm7, %v3704_v38, %v2125_v30  ;;  %v2127_v5 = vrot.slane %v2125_v30, 4  ;;  %4102 = vmatpush3.bf16.msra.mxu1 %v1493_v44  ;;  %v1284_v21 = vrot.slane %v4682_v46, 5  ;;  %v6034_v23 = vld [vmem:[#allocation2_spill] sm:$0xff]  ;;  %v6035_v38 = vld [vmem:[#allocation3_spill] sm:$0xff]  ;;  %v6037_v30 = vld [vmem:[#allocation5_spill] sm:$0xff] }
  0x7e   : > { %v5460_v25 = vcombine.low %v1390_v34, %v1393_v41  ;;  %4214 = vmatmul.mubr.msk.bf16.gmra.mrb[8].mxu0 %vm757_vm3, %v5319_v6  ;;  %4632 = vmatprep.subr.msk.bf16.mxu1 %vm806_vm0, %v3668_v0  ;;  %v1287_v3 = vrot.slane %v4683_v61, 5  ;;  %v3619_v42 = vrot.slane %v4684_v17, 9  ;;  %v1699_v27 = vsel %vm806_vm0, %v3668_v0, 0  ;;  %v3760_v34 = vld [vmem:[%s5952_s1 + $0x10] sm:$0x3]  ;;  %v6044_v0 = vld [vmem:[#allocation22_spill] sm:$0xff] }
  0x7f   : > { %4217 = vmatprep.mubr.msk.bf16.mxu0 %vm757_vm3, %v5343_v11  ;;  %v2129_v32 = vsel %vm5198_vm7, %v2127_v5, %v2128_v10  ;;  %v1286_v1 = vrot.slane %v1284_v21, 4  ;;  %v2573_v60 = vsel %vm806_vm0, %v5339_v43, 0  ;;  %v5590_v43 = vld [vmem:[%s4781_s8 + $0xd0] sm:$0xf]  ;;  %v2785_v54 = vsel %vm806_vm0, %v3760_v34, 0  ;;  %v6040_v10 = vld [vmem:[#allocation9_spill] sm:$0xff] }
  0x80   : > { %4082 = vmatmul.mubr.msk.bf16.gmra.mrb[12].mxu1 %vm757_vm3, %v5316_v12  ;;  %v5477_v14 = vcombine.low %v2126_v36, %v2129_v32  ;;  %v1285_v13 = vsel %vm5198_vm7, %v3619_v42, %v1284_v21  ;;  %v2550_v41 = vshll.u32 %v5590_v43, 16  ;;  %v318_v36 = vld [vmem:[%s4781_s8 + $0xd4] sm:$0x1]  ;;  %v6045_v5 = vld [vmem:[#allocation25_spill] sm:$0xff] }
  0x81   : > { %4085 = vmatprep.mubr.msk.bf16.mxu1 %vm757_vm3, %v5327_v47  ;;  %v1288_v53 = vsel %vm5198_vm7, %v1286_v1, %v1287_v3  ;;  %v2560_v21 = vshll.u32 %v318_v36, 16 }
  0x82   : > { %v3636_v57 = vcombine.low %v1285_v13, %v1288_v53  ;;  %v2552_v49 = vrot.slane %v2550_v41, 5 }
  0x83   : > { %v2562_v61 = vrot.slane %v2560_v21, 5 }
  0x86   : > { %4218 = vmatmul.mubr.msk.bf16.gmra.mrb[12].mxu0 %vm757_vm3, %v5361_v28 }
  0x87   : > { %4221 = vmatprep.mubr.msk.bf16.mxu0 %vm757_vm3, %v5374_v20 }
  0x88   : > { %4086 = vmatmul.mubr.msk.bf16.gmra.mrb[16].mxu1 %vm757_vm3, %v5349_v18 }
  0x89   : > { %4089 = vmatprep.mubr.msk.bf16.mxu1 %vm757_vm3, %v5367_v56 }
  0x8e   : > { %4222 = vmatmul.mubr.msk.bf16.gmra.mrb[16].mxu0 %vm757_vm3, %v5391_v37 }
  0x8f   : > { %4225 = vmatprep.mubr.msk.bf16.mxu0 %vm757_vm3, %v5406_v15 }
  0x90   : > { %4090 = vmatmul.mubr.msk.bf16.gmra.mrb[20].mxu1 %vm757_vm3, %v5382_v51 }
  0x91   : > { %4093 = vmatprep.mubr.msk.bf16.mxu1 %vm757_vm3, %v5397_v59 }
  0x96   : > { %4226 = vmatmul.mubr.msk.bf16.gmra.mrb[20].mxu0 %vm757_vm3, %v5417_v22 }
  0x97   : > { %4229 = vmatprep.mubr.msk.bf16.mxu0 %vm757_vm3, %v5438_v8 }
  0x98   : > { %4094 = vmatmul.mubr.msk.bf16.gmra.mrb[24].mxu1 %vm757_vm3, %v5412_v58 }
  0x99   : > { %4097 = vmatprep.mubr.msk.bf16.mxu1 %vm757_vm3, %v5427_v45 }
  0x9e   : > { %4230 = vmatmul.mubr.msk.bf16.gmra.mrb[24].mxu0 %vm757_vm3, %v5454_v7 }
  0x9f   : > { %4233 = vmatprep.mubr.msk.bf16.mxu0 %vm757_vm3, %v5460_v25 }
  0xa0   : > { %4098 = vmatmul.mubr.msk.bf16.gmra.mrb[28].mxu1 %vm757_vm3, %v5444_v19 }
  0xa1   : > { %4103 = vmatprep.mubr.msk.bf16.mxu1 %vm757_vm3, %v3636_v57 }
  0xa6   : > { %4234 = vmatmul.mubr.msk.bf16.gmra.mrb[28].mxu0 %vm757_vm3, %v5477_v14 }
  0xa7   : > { %4239 = vmatprep.mubr.msk.bf16.mxu0 %vm757_vm3, %v5225_v52 }
  0xa8   : > { %4104 = vmatmul.mubr.msk.bf16.vlgmr.msra.gmra.mrb[0].mxu1 %vm757_vm3, %v5243_v33  ;;  %v5587_v33 = vld [vmem:[%s4781_s8 + $0xcc] sm:$0xf] }
  0xa9   : > { %4107 = vmatprep.mubr.msk.bf16.mxu1 %vm757_vm3, %v5250_v62  ;;  %4136 = vmatpush3.bf16.msra.mxu1 %v1699_v27  ;;  %v3724_v40 = vcombine.low %v5587_v33, %v5590_v43 }
  0xaa   : > { %4638 = vmatprep.subr.msk.bf16.mxu1 %vm3124_vm8, %v3067_v35 }
  0xae   : > { %4240 = vmatmul.mubr.msk.bf16.vlgmr.msra.gmra.mrb[0].mxu0 %vm757_vm3, %v5256_v9 }
  0xaf   : > { %4272 = vmatpush3.bf16.msra.mxu0 %v2573_v60  ;;  %4243 = vmatprep.mubr.msk.bf16.mxu0 %vm757_vm3, %v5269_v16 }
  0xb0   : > { %4108 = vmatmul.mubr.msk.bf16.gmra.mrb[4].mxu1 %vm757_vm3, %v5272_v63  ;;  %4637 = vmatprep.subr.msk.bf16.mxu0 %vm806_vm0, %v3760_v34 }
  0xb1   : > { %4111 = vmatprep.mubr.msk.bf16.mxu1 %vm757_vm3, %v5295_v48 }
  0xb6   : > { %4244 = vmatmul.mubr.msk.bf16.gmra.mrb[4].mxu0 %vm757_vm3, %v5282_v29 }
  0xb7   : > { %4247 = vmatprep.mubr.msk.bf16.mxu0 %vm757_vm3, %v5301_v31 }
  0xb8   : > { %4112 = vmatmul.mubr.msk.bf16.gmra.mrb[8].mxu1 %vm757_vm3, %v5310_v55 }
  0xb9   : > { %4115 = vmatprep.mubr.msk.bf16.mxu1 %vm757_vm3, %v5319_v6 }
  0xbe   : > { %4248 = vmatmul.mubr.msk.bf16.gmra.mrb[8].mxu0 %vm757_vm3, %v5316_v12 }
  0xbf   : > { %4251 = vmatprep.mubr.msk.bf16.mxu0 %vm757_vm3, %v5327_v47 }
  0xc0   : > { %4116 = vmatmul.mubr.msk.bf16.gmra.mrb[12].mxu1 %vm757_vm3, %v5343_v11 }
  0xc1   : > { %4119 = vmatprep.mubr.msk.bf16.mxu1 %vm757_vm3, %v5361_v28 }
  0xc6   : > { %4252 = vmatmul.mubr.msk.bf16.gmra.mrb[12].mxu0 %vm757_vm3, %v5349_v18 }
  0xc7   : > { %4255 = vmatprep.mubr.msk.bf16.mxu0 %vm757_vm3, %v5367_v56 }
  0xc8   : > { %4120 = vmatmul.mubr.msk.bf16.gmra.mrb[16].mxu1 %vm757_vm3, %v5374_v20 }
  0xc9   : > { %4123 = vmatprep.mubr.msk.bf16.mxu1 %vm757_vm3, %v5391_v37 }
  0xce   : > { %4256 = vmatmul.mubr.msk.bf16.gmra.mrb[16].mxu0 %vm757_vm3, %v5382_v51 }
  0xcf   : > { %4259 = vmatprep.mubr.msk.bf16.mxu0 %vm757_vm3, %v5397_v59 }
  0xd0   : > { %4124 = vmatmul.mubr.msk.bf16.gmra.mrb[20].mxu1 %vm757_vm3, %v5406_v15 }
  0xd1   : > { %4127 = vmatprep.mubr.msk.bf16.mxu1 %vm757_vm3, %v5417_v22 }
  0xd6   : > { %4260 = vmatmul.mubr.msk.bf16.gmra.mrb[20].mxu0 %vm757_vm3, %v5412_v58 }
  0xd7   : > { %4263 = vmatprep.mubr.msk.bf16.mxu0 %vm757_vm3, %v5427_v45 }
  0xd8   : > { %4128 = vmatmul.mubr.msk.bf16.gmra.mrb[24].mxu1 %vm757_vm3, %v5438_v8 }
  0xd9   : > { %4131 = vmatprep.mubr.msk.bf16.mxu1 %vm757_vm3, %v5454_v7 }
  0xde   : > { %4264 = vmatmul.mubr.msk.bf16.gmra.mrb[24].mxu0 %vm757_vm3, %v5444_v19 }
  0xdf   : > { %4267 = vmatprep.mubr.msk.bf16.mxu0 %vm757_vm3, %v5468_v26 }
  0xe0   : > { %4132 = vmatmul.mubr.msk.bf16.gmra.mrb[28].mxu1 %vm757_vm3, %v5460_v25 }
  0xe1   : > { %4137 = vmatprep.mubr.msk.bf16.mxu1 %vm757_vm3, %v4836_v39  ;;  %v6036_v39 = vld [vmem:[#allocation4_spill] sm:$0xff] }
  0xe6   : > { %4268 = vmatmul.mubr.msk.bf16.gmra.mrb[28].mxu0 %vm757_vm3, %v3724_v40 }
  0xe7   : > { %4273 = vmatprep.mubr.msk.bf16.mxu0 %vm757_vm3, %v6034_v23 }
  0xe8   : > { %4138 = vmatmul.mubr.msk.bf16.vlgmr.msra.gmra.mrb[0].mxu1 %vm757_vm3, %v5225_v52  ;;  %v6038_v52 = vld [vmem:[#allocation6_spill] sm:$0xff] }
  0xe9   : > { %4141 = vmatprep.mubr.msk.bf16.mxu1 %vm757_vm3, %v5256_v9  ;;  %v6039_v9 = vld [vmem:[#allocation8_spill] sm:$0xff] }
  0xee   : > { %4274 = vmatmul.mubr.msk.bf16.vlgmr.msra.gmra.mrb[0].mxu0 %vm757_vm3, %v6035_v38 }
  0xef   : > { %4306 = vmatpush3.bf16.msra.mxu0 %v2785_v54  ;;  %4277 = vmatprep.mubr.msk.bf16.mxu0 %vm757_vm3, %v6036_v39 }
  0xf0   : > { %4142 = vmatmul.mubr.msk.bf16.gmra.mrb[4].mxu1 %vm757_vm3, %v5269_v16  ;;  %v6041_v16 = vld [vmem:[#allocation11_spill] sm:$0xff] }
  0xf1   : > { %4145 = vmatprep.mubr.msk.bf16.mxu1 %vm757_vm3, %v5282_v29  ;;  %v6042_v29 = vld [vmem:[#allocation15_spill] sm:$0xff] }
  0xf6   : > { %4278 = vmatmul.mubr.msk.bf16.gmra.mrb[4].mxu0 %vm757_vm3, %v6037_v30 }
  0xf7   : > { %4281 = vmatprep.mubr.msk.bf16.mxu0 %vm757_vm3, %v6038_v52 }
  0xf8   : > { %4146 = vmatmul.mubr.msk.bf16.gmra.mrb[8].mxu1 %vm757_vm3, %v5301_v31  ;;  %v6043_v31 = vld [vmem:[#allocation19_spill] sm:$0xff] }
  0xf9   : > { %4149 = vmatprep.mubr.msk.bf16.mxu1 %vm757_vm3, %v5316_v12  ;;  %v2541_v12 = vshrl.u32 %v5587_v33, 16 }
  0xfe   : > { %4282 = vmatmul.mubr.msk.bf16.gmra.mrb[8].mxu0 %vm757_vm3, %v6039_v9 }
  0xff   : > { %4285 = vmatprep.mubr.msk.bf16.mxu0 %vm757_vm3, %v6040_v10 }
 0x100   : > { %4150 = vmatmul.mubr.msk.bf16.gmra.mrb[12].mxu1 %vm757_vm3, %v5327_v47  ;;  %v2544_v47 = vshll.u32 %v5587_v33, 16 }
 0x101   : > { %4153 = vmatprep.mubr.msk.bf16.mxu1 %vm757_vm3, %v5349_v18  ;;  %v2554_v18 = vshrl.u32 %v5590_v43, 16 }
 0x103   : > { %v2556_v44 = vrot.slane %v2554_v18, 4 }
 0x105   : > { %v2557_v46 = vor.u32 %v2556_v44, %v2552_v49 }
 0x106   : > { %4286 = vmatmul.mubr.msk.bf16.gmra.mrb[12].mxu0 %vm757_vm3, %v6041_v16 }
 0x107   : > { %4289 = vmatprep.mubr.msk.bf16.mxu0 %vm757_vm3, %v6042_v29  ;;  %v5761_v29 = vld [vmem:[%s5953_s2] ss:$0 sm:$0xff] }
 0x108   : > { %4154 = vmatmul.mubr.msk.bf16.gmra.mrb[16].mxu1 %vm757_vm3, %v5367_v56  ;;  %v2543_v56 = vrot.slane %v2541_v12, 4 }
 0x109   : > { %4157 = vmatprep.mubr.msk.bf16.mxu1 %vm757_vm3, %v5382_v51  ;;  %v2546_v51 = vrot.slane %v2544_v47, 5 }
 0x10b   : > { %v2547_v32 = vor.u32 %v2546_v51, %v2543_v56 }
 0x10e   : > { %4290 = vmatmul.mubr.msk.bf16.gmra.mrb[16].mxu0 %vm757_vm3, %v6043_v31 }
 0x10f   : > { %4293 = vmatprep.mubr.msk.bf16.mxu0 %vm757_vm3, %v6044_v0 }
 0x110   : > { %4158 = vmatmul.mubr.msk.bf16.gmra.mrb[20].mxu1 %vm757_vm3, %v5397_v59  ;;  %v2548_v59 = vrot.slane %v2547_v32, 4 }
 0x111   : > { %4161 = vmatprep.mubr.msk.bf16.mxu1 %vm757_vm3, %v5412_v58  ;;  %v2558_v58 = vrot.slane %v2557_v46, 4 }
 0x113   : > { %v2563_v3 = vsel %vm4830_vm4, %v2558_v58, %v2562_v61 }
 0x116   : > { %4294 = vmatmul.mubr.msk.bf16.gmra.mrb[20].mxu0 %vm757_vm3, %v6045_v5 }
 0x117   : > { %4297 = vmatprep.mubr.msk.bf16.mxu0 %vm757_vm3, %v5192_v24  ;;  %v2553_v24 = vsel %vm4830_vm4, %v2548_v59, %v2552_v49 }
 0x118   : > { %4162 = vmatmul.mubr.msk.bf16.gmra.mrb[24].mxu1 %vm757_vm3, %v5427_v45  ;;  %v3742_v45 = vcombine.low %v2553_v24, %v2563_v3 }
 0x119   : > { %4165 = vmatprep.mubr.msk.bf16.mxu1 %vm757_vm3, %v5444_v19 }
 0x11e   : > { %4298 = vmatmul.mubr.msk.bf16.gmra.mrb[24].mxu0 %vm757_vm3, %v5213_v2  ;;  %v3126_v2 = vsel %vm3124_vm8, %v3067_v35, 0 }
 0x11f   : > { %4301 = vmatprep.mubr.msk.bf16.mxu0 %vm757_vm3, %v5263_v4  ;;  %4340 = vmatpush3.bf16.msra.mxu1 %v3126_v2  ;;  %v3759_v4 = vrot.slane %v5587_v33, 9 }
 0x120   : > { %4166 = vmatmul.mubr.msk.bf16.gmra.mrb[28].mxu1 %vm757_vm3, %v5468_v26 }
 0x126   : > { %4302 = vmatmul.mubr.msk.bf16.gmra.mrb[28].mxu0 %vm757_vm3, %v3742_v45 }
 0x127   : > { %4307 = vmatprep.mubr.msk.bf16.mxu0 %vm757_vm3, %v5250_v62  ;;  %v2771_v62 = vrot.slane %v5590_v43, 5 }
 0x12e   : > { %4308 = vmatmul.mubr.msk.bf16.vlgmr.msra.gmra.mrb[0].mxu0 %vm757_vm3, %v5272_v63  ;;  %v2773_v63 = vrot.slane %v2771_v62, 4 }
 0x12f   : > { %4311 = vmatprep.mubr.msk.bf16.mxu0 %vm757_vm3, %v5295_v48  ;;  %v2774_v48 = vrot.slane %v318_v36, 5 }
 0x136   : > { %4312 = vmatmul.mubr.msk.bf16.gmra.mrb[4].mxu0 %vm757_vm3, %v5310_v55  ;;  %v2772_v55 = vsel %vm5198_vm7, %v3759_v4, %v2771_v62 }
 0x137   : > { %4315 = vmatprep.mubr.msk.bf16.mxu0 %vm757_vm3, %v5319_v6  ;;  %v2775_v6 = vsel %vm5198_vm7, %v2773_v63, %v2774_v48 }
 0x13e   : > { %4316 = vmatmul.mubr.msk.bf16.gmra.mrb[8].mxu0 %vm757_vm3, %v5343_v11  ;;  %v3761_v11 = vcombine.low %v2772_v55, %v2775_v6 }
 0x13f   : > { %4319 = vmatprep.mubr.msk.bf16.mxu0 %vm757_vm3, %v5361_v28 }
 0x146   : > { %4320 = vmatmul.mubr.msk.bf16.gmra.mrb[12].mxu0 %vm757_vm3, %v5374_v20 }
 0x147   : > { %4323 = vmatprep.mubr.msk.bf16.mxu0 %vm757_vm3, %v5391_v37 }
 0x14e   : > { %4324 = vmatmul.mubr.msk.bf16.gmra.mrb[16].mxu0 %vm757_vm3, %v5406_v15 }
 0x14f   : > { %4327 = vmatprep.mubr.msk.bf16.mxu0 %vm757_vm3, %v5417_v22 }
 0x156   : > { %4328 = vmatmul.mubr.msk.bf16.gmra.mrb[20].mxu0 %vm757_vm3, %v5438_v8 }
 0x157   : > { %4331 = vmatprep.mubr.msk.bf16.mxu0 %vm757_vm3, %v5454_v7 }
 0x15e   : > { %4332 = vmatmul.mubr.msk.bf16.gmra.mrb[24].mxu0 %vm757_vm3, %v5460_v25 }
 0x15f   : > { %4335 = vmatprep.mubr.msk.bf16.mxu0 %vm757_vm3, %v5477_v14 }
 0x166   : > { %4336 = vmatmul.mubr.msk.bf16.gmra.mrb[28].mxu0 %vm757_vm3, %v3761_v11 }
 0x1bb   : > { %v4139_v28 = vpop.f32.mrb[0].mxu1 }
 0x1bc   : > { %v1735_v20 = vpop.f32.mrb[1].mxu1 }
 0x1bd   : > { %v4140_v37 = vpop.f32.mrb[2].mxu1 }
 0x1be   : > { %v1738_v15 = vpop.f32.mrb[3].mxu1 }
 0x1c3   : > { %v4143_v22 = vpop.f32.mrb[4].mxu1 }
 0x1c4   : > { %v1751_v8 = vpop.f32.mrb[5].mxu1 }
 0x1c5   : > { %v4144_v19 = vpop.f32.mrb[6].mxu1 }
 0x1c6   : > { %v1754_v7 = vpop.f32.mrb[7].mxu1 }
 0x1cb   : > { %v5710_v25 = vpop.f32.mrb[8].mxu1 }
 0x1cc   : > { %v5712_v26 = vpop.f32.mrb[9].mxu1 }
 0x1cd   : > { %v5714_v14 = vpop.f32.mrb[10].mxu1 }
 0x1ce   : > { %v5716_v17 = vpop.f32.mrb[11].mxu1 }
 0x1d3   : > { %v5718_v50 = vpop.f32.mrb[12].mxu1 }
 0x1d4   : > { %v5720_v42 = vpop.f32.mrb[13].mxu1 }
 0x1d5   : > { %v5722_v1 = vpop.f32.mrb[14].mxu1 }
 0x1d6   : > { %v5724_v13 = vpop.f32.mrb[15].mxu1 }
 0x1db   : > { %v5726_v53 = vpop.f32.mrb[16].mxu1 }
 0x1dc   : > { %v5728_v57 = vpop.f32.mrb[17].mxu1 }
 0x1dd   : > { %v5730_v27 = vpop.f32.mrb[18].mxu1 }
 0x1de   : > { %v5732_v60 = vpop.f32.mrb[19].mxu1 }
 0x1e3   : > { %v5734_v34 = vpop.f32.mrb[20].mxu1 }
 0x1e4   : > { %v5736_v33 = vpop.f32.mrb[21].mxu1 }
 0x1e5   : > { %v5738_v43 = vpop.f32.mrb[22].mxu1 }
 0x1e6   : > { %v5740_v40 = vpop.f32.mrb[23].mxu1 }
 0x1eb   : > { %v5742_v23 = vpop.f32.mrb[24].mxu1 }
 0x1ec   : > { %v5744_v54 = vpop.f32.mrb[25].mxu1 }
 0x1ed   : > { %v5746_v38 = vpop.f32.mrb[26].mxu1 }
 0x1ee   : > { %v5748_v39 = vpop.f32.mrb[27].mxu1 }
 0x1f3   : > { %v5750_v30 = vpop.f32.mrb[28].mxu1 }
 0x1f4   : > { %v5752_v52 = vpop.f32.mrb[29].mxu1 }
 0x1f5   : > { %v5754_v9 = vpop.f32.mrb[30].mxu1 }
 0x1f6   : > { %v5756_v10 = vpop.f32.mrb[31].mxu1 }
 0x201   : > { %v4309_v16 = vpop.f32.mrb[0].mxu0 }
 0x202   : > { %v4373_v31 = vadd.f32 %v4309_v16, %v4139_v28  ;;  %v2821_v12 = vpop.f32.mrb[1].mxu0 }
 0x203   : > { %v4374_v47 = vadd.f32 %v2821_v12, %v1735_v20  ;;  %v4310_v18 = vpop.f32.mrb[2].mxu0 }
 0x204   : > { %v2989_v0 = vadd.f32 %v4373_v31, %v5761_v29  ;;  %v4375_v41 = vadd.f32 %v4310_v18, %v4140_v37  ;;  %v2824_v56 = vpop.f32.mrb[3].mxu0 }
 0x205   : > { %v2987_v51 = vadd.f32 %v4374_v47, %v5761_v29  ;;  %v4376_v49 = vadd.f32 %v2824_v56, %v1738_v15 }
 0x206   : > { %v2990_v44 = vadd.f32 %v4375_v41, %v5761_v29  ;;  %v3021_v5 = vmax.f32 %v2989_v0, 0.0 }
 0x207   : > { %v2988_v36 = vadd.f32 %v4376_v49, %v5761_v29  ;;  %v3019_v46 = vmax.f32 %v2987_v51, 0.0 }
 0x208   : > { %v3022_v32 = vmax.f32 %v2990_v44, 0.0 }
 0x209   : > { %v3020_v21 = vmax.f32 %v2988_v36, 0.0  ;;  %v4313_v59 = vpop.f32.mrb[4].mxu0 }
 0x20a   : > { %v3052_v58 = vpack.c.bf16 %v3022_v32, %v3021_v5  ;;  %v4377_v61 = vadd.f32 %v4313_v59, %v4143_v22  ;;  %v2837_v24 = vpop.f32.mrb[5].mxu0 }
 0x20b   : > { %v3051_v3 = vpack.c.bf16 %v3020_v21, %v3019_v46  ;;  %v4378_v45 = vadd.f32 %v2837_v24, %v1751_v8  ;;  %v4314_v35 = vpop.f32.mrb[6].mxu0 }
 0x20c   : > { %v2993_v2 = vadd.f32 %v4377_v61, %v5761_v29  ;;  %v4379_v62 = vadd.f32 %v4314_v35, %v4144_v19  ;;  %v2840_v4 = vpop.f32.mrb[7].mxu0 }
 0x20d   : > { %v2991_v63 = vadd.f32 %v4378_v45, %v5761_v29  ;;  %v4380_v48 = vadd.f32 %v2840_v4, %v1754_v7  ;;  %4341 = vmatprep.mubr.msk.bf16.mxu1 %vm3075_vm9, %v3051_v3 }
 0x20e   : > { %v2994_v55 = vadd.f32 %v4379_v62, %v5761_v29  ;;  %4342 = vmatmul.mubr.msk.bf16.vlgmr.msra.gmra.mrb[32].mxu1 %vm3075_vm9, %v3052_v58  ;;  %v3025_v11 = vmax.f32 %v2993_v2, 0.0 }
 0x20f   : > { %v2992_v6 = vadd.f32 %v4380_v48, %v5761_v29  ;;  %v3023_v20 = vmax.f32 %v2991_v63, 0.0 }
 0x210   : > { %v3026_v28 = vmax.f32 %v2994_v55, 0.0 }
 0x211   : > { %v3024_v37 = vmax.f32 %v2992_v6, 0.0  ;;  %v4317_v15 = vpop.f32.mrb[8].mxu0 }
 0x212   : > { %v3054_v22 = vpack.c.bf16 %v3026_v28, %v3025_v11  ;;  %v4381_v8 = vadd.f32 %v4317_v15, %v5710_v25  ;;  %v2853_v19 = vpop.f32.mrb[9].mxu0 }
 0x213   : > { %v3053_v16 = vpack.c.bf16 %v3024_v37, %v3023_v20  ;;  %v4382_v7 = vadd.f32 %v2853_v19, %v5712_v26  ;;  %v4318_v31 = vpop.f32.mrb[10].mxu0 }
 0x214   : > { %v2997_v12 = vadd.f32 %v4381_v8, %v5761_v29  ;;  %v4383_v47 = vadd.f32 %v4318_v31, %v5714_v14  ;;  %v2856_v18 = vpop.f32.mrb[11].mxu0 }
 0x215   : > { %v2995_v0 = vadd.f32 %v4382_v7, %v5761_v29  ;;  %v4384_v41 = vadd.f32 %v2856_v18, %v5716_v17  ;;  %4345 = vmatprep.mubr.msk.bf16.mxu1 %vm3075_vm9, %v3053_v16 }
 0x216   : > { %v2998_v56 = vadd.f32 %v4383_v47, %v5761_v29  ;;  %4346 = vmatmul.mubr.msk.bf16.gmra.mrb[36].mxu1 %vm3075_vm9, %v3054_v22  ;;  %v3029_v51 = vmax.f32 %v2997_v12, 0.0 }
 0x217   : > { %v2996_v25 = vadd.f32 %v4384_v41, %v5761_v29  ;;  %v3027_v49 = vmax.f32 %v2995_v0, 0.0 }
 0x218   : > { %v3030_v26 = vmax.f32 %v2998_v56, 0.0 }
 0x219   : > { %v3028_v44 = vmax.f32 %v2996_v25, 0.0  ;;  %v4321_v36 = vpop.f32.mrb[12].mxu0 }
 0x21a   : > { %v3056_v5 = vpack.c.bf16 %v3030_v26, %v3029_v51  ;;  %v4385_v14 = vadd.f32 %v4321_v36, %v5718_v50  ;;  %v2869_v32 = vpop.f32.mrb[13].mxu0 }
 0x21b   : > { %v3055_v46 = vpack.c.bf16 %v3028_v44, %v3027_v49  ;;  %v4386_v17 = vadd.f32 %v2869_v32, %v5720_v42  ;;  %v4322_v21 = vpop.f32.mrb[14].mxu0 }
 0x21c   : > { %v3001_v59 = vadd.f32 %v4385_v14, %v5761_v29  ;;  %v4387_v58 = vadd.f32 %v4322_v21, %v5722_v1  ;;  %v2872_v61 = vpop.f32.mrb[15].mxu0 }
 0x21d   : > { %v2999_v24 = vadd.f32 %v4386_v17, %v5761_v29  ;;  %v4388_v3 = vadd.f32 %v2872_v61, %v5724_v13  ;;  %4349 = vmatprep.mubr.msk.bf16.mxu1 %vm3075_vm9, %v3055_v46 }
 0x21e   : > { %v3002_v45 = vadd.f32 %v4387_v58, %v5761_v29  ;;  %4350 = vmatmul.mubr.msk.bf16.gmra.mrb[40].mxu1 %vm3075_vm9, %v3056_v5  ;;  %v3033_v35 = vmax.f32 %v3001_v59, 0.0 }
 0x21f   : > { %v3000_v50 = vadd.f32 %v4388_v3, %v5761_v29  ;;  %v3031_v2 = vmax.f32 %v2999_v24, 0.0 }
 0x220   : > { %v3034_v42 = vmax.f32 %v3002_v45, 0.0 }
 0x221   : > { %v3032_v62 = vmax.f32 %v3000_v50, 0.0  ;;  %v4325_v4 = vpop.f32.mrb[16].mxu0 }
 0x222   : > { %v3058_v63 = vpack.c.bf16 %v3034_v42, %v3033_v35  ;;  %v4389_v1 = vadd.f32 %v4325_v4, %v5726_v53  ;;  %v2885_v48 = vpop.f32.mrb[17].mxu0 }
 0x223   : > { %v3057_v55 = vpack.c.bf16 %v3032_v62, %v3031_v2  ;;  %v4390_v13 = vadd.f32 %v2885_v48, %v5728_v57  ;;  %v4326_v6 = vpop.f32.mrb[18].mxu0 }
 0x224   : > { %v3005_v11 = vadd.f32 %v4389_v1, %v5761_v29  ;;  %v4391_v28 = vadd.f32 %v4326_v6, %v5730_v27  ;;  %v2888_v20 = vpop.f32.mrb[19].mxu0 }
 0x225   : > { %v3003_v37 = vadd.f32 %v4390_v13, %v5761_v29  ;;  %v4392_v15 = vadd.f32 %v2888_v20, %v5732_v60  ;;  %4353 = vmatprep.mubr.msk.bf16.mxu1 %vm3075_vm9, %v3057_v55 }
 0x226   : > { %v3006_v22 = vadd.f32 %v4391_v28, %v5761_v29  ;;  %4354 = vmatmul.mubr.msk.bf16.gmra.mrb[44].mxu1 %vm3075_vm9, %v3058_v63  ;;  %v3037_v8 = vmax.f32 %v3005_v11, 0.0 }
 0x227   : > { %v3004_v53 = vadd.f32 %v4392_v15, %v5761_v29  ;;  %v3035_v19 = vmax.f32 %v3003_v37, 0.0 }
 0x228   : > { %v3038_v57 = vmax.f32 %v3006_v22, 0.0 }
 0x229   : > { %v3036_v16 = vmax.f32 %v3004_v53, 0.0  ;;  %v4329_v7 = vpop.f32.mrb[20].mxu0 }
 0x22a   : > { %v3060_v31 = vpack.c.bf16 %v3038_v57, %v3037_v8  ;;  %v4393_v27 = vadd.f32 %v4329_v7, %v5734_v34  ;;  %v2901_v12 = vpop.f32.mrb[21].mxu0 }
 0x22b   : > { %v3059_v47 = vpack.c.bf16 %v3036_v16, %v3035_v19  ;;  %v4394_v60 = vadd.f32 %v2901_v12, %v5736_v33  ;;  %v4330_v18 = vpop.f32.mrb[22].mxu0 }
 0x22c   : > { %v3009_v0 = vadd.f32 %v4393_v27, %v5761_v29  ;;  %v4395_v41 = vadd.f32 %v4330_v18, %v5738_v43  ;;  %v2904_v56 = vpop.f32.mrb[23].mxu0 }
 0x22d   : > { %v3007_v25 = vadd.f32 %v4394_v60, %v5761_v29  ;;  %v4396_v51 = vadd.f32 %v2904_v56, %v5740_v40  ;;  %4357 = vmatprep.mubr.msk.bf16.mxu1 %vm3075_vm9, %v3059_v47 }
 0x22e   : > { %v3010_v26 = vadd.f32 %v4395_v41, %v5761_v29  ;;  %4358 = vmatmul.mubr.msk.bf16.gmra.mrb[48].mxu1 %vm3075_vm9, %v3060_v31  ;;  %v3041_v49 = vmax.f32 %v3009_v0, 0.0 }
 0x22f   : > { %v3008_v34 = vadd.f32 %v4396_v51, %v5761_v29  ;;  %v3039_v44 = vmax.f32 %v3007_v25, 0.0 }
 0x230   : > { %v3042_v33 = vmax.f32 %v3010_v26, 0.0 }
 0x231   : > { %v3040_v36 = vmax.f32 %v3008_v34, 0.0  ;;  %v4333_v5 = vpop.f32.mrb[24].mxu0 }
 0x232   : > { %v3062_v14 = vpack.c.bf16 %v3042_v33, %v3041_v49  ;;  %v4397_v43 = vadd.f32 %v4333_v5, %v5742_v23  ;;  %v2917_v32 = vpop.f32.mrb[25].mxu0 }
 0x233   : > { %v3061_v46 = vpack.c.bf16 %v3040_v36, %v3039_v44  ;;  %v4398_v40 = vadd.f32 %v2917_v32, %v5744_v54  ;;  %v4334_v17 = vpop.f32.mrb[26].mxu0 }
 0x234   : > { %v3013_v21 = vadd.f32 %v4397_v43, %v5761_v29  ;;  %v4399_v59 = vadd.f32 %v4334_v17, %v5746_v38  ;;  %v2920_v58 = vpop.f32.mrb[27].mxu0 }
 0x235   : > { %v3011_v61 = vadd.f32 %v4398_v40, %v5761_v29  ;;  %v4400_v24 = vadd.f32 %v2920_v58, %v5748_v39  ;;  %4361 = vmatprep.mubr.msk.bf16.mxu1 %vm3075_vm9, %v3061_v46 }
 0x236   : > { %v3014_v3 = vadd.f32 %v4399_v59, %v5761_v29  ;;  %4362 = vmatmul.mubr.msk.bf16.gmra.mrb[52].mxu1 %vm3075_vm9, %v3062_v14  ;;  %v3045_v45 = vmax.f32 %v3013_v21, 0.0 }
 0x237   : > { %v3012_v23 = vadd.f32 %v4400_v24, %v5761_v29  ;;  %v3043_v50 = vmax.f32 %v3011_v61, 0.0 }
 0x238   : > { %v3046_v54 = vmax.f32 %v3014_v3, 0.0 }
 0x239   : > { %v3044_v35 = vmax.f32 %v3012_v23, 0.0  ;;  %v4337_v42 = vpop.f32.mrb[28].mxu0 }
 0x23a   : > { %v3064_v2 = vpack.c.bf16 %v3046_v54, %v3045_v45  ;;  %v4401_v38 = vadd.f32 %v4337_v42, %v5750_v30  ;;  %v2933_v62 = vpop.f32.mrb[29].mxu0 }
 0x23b   : > { %v3063_v4 = vpack.c.bf16 %v3044_v35, %v3043_v50  ;;  %v4402_v39 = vadd.f32 %v2933_v62, %v5752_v52  ;;  %v4338_v63 = vpop.f32.mrb[30].mxu0 }
 0x23c   : > { %v3017_v1 = vadd.f32 %v4401_v38, %v5761_v29  ;;  %v4403_v48 = vadd.f32 %v4338_v63, %v5754_v9  ;;  %v2936_v55 = vpop.f32.mrb[31].mxu0 }
 0x23d   : > { %v3015_v13 = vadd.f32 %v4402_v39, %v5761_v29  ;;  %v4404_v6 = vadd.f32 %v2936_v55, %v5756_v10  ;;  %4365 = vmatprep.mubr.msk.bf16.mxu1 %vm3075_vm9, %v3063_v4  ;;  %v5838_v10 = vld [vmem:[%s5955_s4] ss:$0 sm:$0xff] }
 0x23e   : > { %v3018_v11 = vadd.f32 %v4403_v48, %v5761_v29  ;;  %4366 = vmatmul.mubr.msk.bf16.gmra.mrb[56].mxu1 %vm3075_vm9, %v3064_v2  ;;  %v3049_v52 = vmax.f32 %v3017_v1, 0.0 }
 0x23f   : > { %v3016_v30 = vadd.f32 %v4404_v6, %v5761_v29  ;;  %v3047_v20 = vmax.f32 %v3015_v13, 0.0 }
 0x240   : > { %v3050_v28 = vmax.f32 %v3018_v11, 0.0 }
 0x241   : > { %v3048_v37 = vmax.f32 %v3016_v30, 0.0 }
 0x242   : > { %v3066_v15 = vpack.c.bf16 %v3050_v28, %v3049_v52 }
 0x243   : > { %v3065_v9 = vpack.c.bf16 %v3048_v37, %v3047_v20 }
 0x245   : > { %4369 = vmatprep.mubr.msk.bf16.mxu1 %vm3075_vm9, %v3065_v9 }
 0x246   : > { %4370 = vmatmul.mubr.msk.bf16.gmra.mrb[60].mxu1 %vm3075_vm9, %v3066_v15 }
 0x2e1   : > { %v4343_v22 = vpop.f32.mrb[32].mxu1 }
 0x2e2   : > { %v3171_v53 = vadd.f32 %v4343_v22, %v5838_v10  ;;  %v3162_v29 = vpop.f32.mrb[33].mxu1 }
 0x2e3   : > { %v3163_v8 = vadd.f32 %v5838_v10, %v3162_v29  ;;  %v4344_v57 = vpop.f32.mrb[34].mxu1 }
 0x2e4   : > { %v3833_v19 = vpack.c.bf16 %v3171_v53, %v3171_v53  ;;  %v3174_v16 = vadd.f32 %v4344_v57, %v5838_v10  ;;  %v3165_v7 = vpop.f32.mrb[35].mxu1 }
 0x2e5   : > { %v3831_v31 = vpack.c.bf16 %v3163_v8, %v3163_v8  ;;  %v3166_v27 = vadd.f32 %v5838_v10, %v3165_v7 }
 0x2e6   : > { %3420 = vst.msk [vmem:[%s5845_s7 + $0x8] sm:$0xf] %vm3417_vm10, %v3833_v19  ;;  %v3834_v12 = vpack.c.bf16 %v3174_v16, %v3174_v16 }
 0x2e7   : > { %3418 = vst.msk [vmem:[%s5845_s7] sm:$0xf] %vm3417_vm10, %v3831_v31  ;;  %v3832_v47 = vpack.c.bf16 %v3166_v27, %v3166_v27 }
 0x2e8   : > { %3421 = vst.msk [vmem:[%s5845_s7 + $0xc] sm:$0xf] %vm3417_vm10, %v3834_v12 }
 0x2e9   : > { %3419 = vst.msk [vmem:[%s5845_s7 + $0x4] sm:$0xf] %vm3417_vm10, %v3832_v47  ;;  %v4347_v60 = vpop.f32.mrb[36].mxu1 }
 0x2ea   : > { %v3187_v18 = vadd.f32 %v4347_v60, %v5838_v10  ;;  %v3178_v0 = vpop.f32.mrb[37].mxu1 }
 0x2eb   : > { %v3179_v41 = vadd.f32 %v5838_v10, %v3178_v0  ;;  %v4348_v56 = vpop.f32.mrb[38].mxu1 }
 0x2ec   : > { %v3837_v25 = vpack.c.bf16 %v3187_v18, %v3187_v18  ;;  %v3190_v51 = vadd.f32 %v4348_v56, %v5838_v10  ;;  %v3181_v26 = vpop.f32.mrb[39].mxu1 }
 0x2ed   : > { %v3835_v34 = vpack.c.bf16 %v3179_v41, %v3179_v41  ;;  %v3182_v49 = vadd.f32 %v5838_v10, %v3181_v26 }
 0x2ee   : > { %3424 = vst.msk [vmem:[%s5845_s7 + $0x18] sm:$0xf] %vm3417_vm10, %v3837_v25  ;;  %v3838_v33 = vpack.c.bf16 %v3190_v51, %v3190_v51 }
 0x2ef   : > { %3422 = vst.msk [vmem:[%s5845_s7 + $0x10] sm:$0xf] %vm3417_vm10, %v3835_v34  ;;  %v3836_v44 = vpack.c.bf16 %v3182_v49, %v3182_v49 }
 0x2f0   : > { %3425 = vst.msk [vmem:[%s5845_s7 + $0x1c] sm:$0xf] %vm3417_vm10, %v3838_v33 }
 0x2f1   : > { %3423 = vst.msk [vmem:[%s5845_s7 + $0x14] sm:$0xf] %vm3417_vm10, %v3836_v44  ;;  %v4351_v36 = vpop.f32.mrb[40].mxu1 }
 0x2f2   : > { %v3203_v5 = vadd.f32 %v4351_v36, %v5838_v10  ;;  %v3194_v14 = vpop.f32.mrb[41].mxu1 }
 0x2f3   : > { %v3195_v43 = vadd.f32 %v5838_v10, %v3194_v14  ;;  %v4352_v32 = vpop.f32.mrb[42].mxu1 }
 0x2f4   : > { %v3841_v46 = vpack.c.bf16 %v3203_v5, %v3203_v5  ;;  %v3206_v40 = vadd.f32 %v4352_v32, %v5838_v10  ;;  %v3197_v17 = vpop.f32.mrb[43].mxu1 }
 0x2f5   : > { %v3839_v21 = vpack.c.bf16 %v3195_v43, %v3195_v43  ;;  %v3198_v59 = vadd.f32 %v5838_v10, %v3197_v17 }
 0x2f6   : > { %3428 = vst.msk [vmem:[%s5845_s7 + $0x28] sm:$0xf] %vm3417_vm10, %v3841_v46  ;;  %v3842_v58 = vpack.c.bf16 %v3206_v40, %v3206_v40 }
 0x2f7   : > { %3426 = vst.msk [vmem:[%s5845_s7 + $0x20] sm:$0xf] %vm3417_vm10, %v3839_v21  ;;  %v3840_v61 = vpack.c.bf16 %v3198_v59, %v3198_v59 }
 0x2f8   : > { %3429 = vst.msk [vmem:[%s5845_s7 + $0x2c] sm:$0xf] %vm3417_vm10, %v3842_v58 }
 0x2f9   : > { %3427 = vst.msk [vmem:[%s5845_s7 + $0x24] sm:$0xf] %vm3417_vm10, %v3840_v61  ;;  %v4355_v24 = vpop.f32.mrb[44].mxu1 }
 0x2fa   : > { %v3219_v3 = vadd.f32 %v4355_v24, %v5838_v10  ;;  %v3210_v23 = vpop.f32.mrb[45].mxu1 }
 0x2fb   : > { %v3211_v45 = vadd.f32 %v5838_v10, %v3210_v23  ;;  %v4356_v54 = vpop.f32.mrb[46].mxu1 }
 0x2fc   : > { %v3845_v50 = vpack.c.bf16 %v3219_v3, %v3219_v3  ;;  %v3222_v35 = vadd.f32 %v4356_v54, %v5838_v10  ;;  %v3213_v42 = vpop.f32.mrb[47].mxu1 }
 0x2fd   : > { %v3843_v2 = vpack.c.bf16 %v3211_v45, %v3211_v45  ;;  %v3214_v38 = vadd.f32 %v5838_v10, %v3213_v42 }
 0x2fe   : > { %3432 = vst.msk [vmem:[%s5845_s7 + $0x38] sm:$0xf] %vm3417_vm10, %v3845_v50  ;;  %v3846_v62 = vpack.c.bf16 %v3222_v35, %v3222_v35 }
 0x2ff   : > { %3430 = vst.msk [vmem:[%s5845_s7 + $0x30] sm:$0xf] %vm3417_vm10, %v3843_v2  ;;  %v3844_v4 = vpack.c.bf16 %v3214_v38, %v3214_v38 }
 0x300   : > { %3433 = vst.msk [vmem:[%s5845_s7 + $0x3c] sm:$0xf] %vm3417_vm10, %v3846_v62 }
 0x301   : > { %3431 = vst.msk [vmem:[%s5845_s7 + $0x34] sm:$0xf] %vm3417_vm10, %v3844_v4  ;;  %v4359_v39 = vpop.f32.mrb[48].mxu1 }
 0x302   : > { %v3235_v63 = vadd.f32 %v4359_v39, %v5838_v10  ;;  %v3226_v1 = vpop.f32.mrb[49].mxu1 }
 0x303   : > { %v3227_v48 = vadd.f32 %v5838_v10, %v3226_v1  ;;  %v4360_v55 = vpop.f32.mrb[50].mxu1 }
 0x304   : > { %v3849_v13 = vpack.c.bf16 %v3235_v63, %v3235_v63  ;;  %v3238_v6 = vadd.f32 %v4360_v55, %v5838_v10  ;;  %v3229_v11 = vpop.f32.mrb[51].mxu1 }
 0x305   : > { %v3847_v30 = vpack.c.bf16 %v3227_v48, %v3227_v48  ;;  %v3230_v52 = vadd.f32 %v5838_v10, %v3229_v11 }
 0x306   : > { %3436 = vst.msk [vmem:[%s5845_s7 + $0x48] sm:$0xf] %vm3417_vm10, %v3849_v13  ;;  %v3850_v28 = vpack.c.bf16 %v3238_v6, %v3238_v6 }
 0x307   : > { %3434 = vst.msk [vmem:[%s5845_s7 + $0x40] sm:$0xf] %vm3417_vm10, %v3847_v30  ;;  %v3848_v20 = vpack.c.bf16 %v3230_v52, %v3230_v52 }
 0x308   : > { %3437 = vst.msk [vmem:[%s5845_s7 + $0x4c] sm:$0xf] %vm3417_vm10, %v3850_v28 }
 0x309   : > { %3435 = vst.msk [vmem:[%s5845_s7 + $0x44] sm:$0xf] %vm3417_vm10, %v3848_v20  ;;  %v4363_v37 = vpop.f32.mrb[52].mxu1 }
 0x30a   : > { %v3251_v15 = vadd.f32 %v4363_v37, %v5838_v10  ;;  %v3242_v9 = vpop.f32.mrb[53].mxu1 }
 0x30b   : > { %v3243_v22 = vadd.f32 %v5838_v10, %v3242_v9  ;;  %v4364_v53 = vpop.f32.mrb[54].mxu1 }
 0x30c   : > { %v3853_v29 = vpack.c.bf16 %v3251_v15, %v3251_v15  ;;  %v3254_v8 = vadd.f32 %v4364_v53, %v5838_v10  ;;  %v3245_v57 = vpop.f32.mrb[55].mxu1 }
 0x30d   : > { %v3851_v19 = vpack.c.bf16 %v3243_v22, %v3243_v22  ;;  %v3246_v16 = vadd.f32 %v5838_v10, %v3245_v57 }
 0x30e   : > { %3440 = vst.msk [vmem:[%s5845_s7 + $0x58] sm:$0xf] %vm3417_vm10, %v3853_v29  ;;  %v3854_v7 = vpack.c.bf16 %v3254_v8, %v3254_v8 }
 0x30f   : > { %3438 = vst.msk [vmem:[%s5845_s7 + $0x50] sm:$0xf] %vm3417_vm10, %v3851_v19  ;;  %v3852_v31 = vpack.c.bf16 %v3246_v16, %v3246_v16 }
 0x310   : > { %3441 = vst.msk [vmem:[%s5845_s7 + $0x5c] sm:$0xf] %vm3417_vm10, %v3854_v7 }
 0x311   : > { %3439 = vst.msk [vmem:[%s5845_s7 + $0x54] sm:$0xf] %vm3417_vm10, %v3852_v31  ;;  %v4367_v27 = vpop.f32.mrb[56].mxu1 }
 0x312   : > { %v3267_v12 = vadd.f32 %v4367_v27, %v5838_v10  ;;  %v3258_v47 = vpop.f32.mrb[57].mxu1 }
 0x313   : > { %v3259_v60 = vadd.f32 %v5838_v10, %v3258_v47  ;;  %v4368_v18 = vpop.f32.mrb[58].mxu1 }
 0x314   : > { %v3857_v0 = vpack.c.bf16 %v3267_v12, %v3267_v12  ;;  %v3270_v41 = vadd.f32 %v4368_v18, %v5838_v10  ;;  %v3261_v56 = vpop.f32.mrb[59].mxu1 }
 0x315   : > { %v3855_v25 = vpack.c.bf16 %v3259_v60, %v3259_v60  ;;  %v3262_v51 = vadd.f32 %v5838_v10, %v3261_v56 }
 0x316   : > { %3444 = vst.msk [vmem:[%s5845_s7 + $0x68] sm:$0xf] %vm3417_vm10, %v3857_v0  ;;  %v3858_v26 = vpack.c.bf16 %v3270_v41, %v3270_v41 }
 0x317   : > { %3442 = vst.msk [vmem:[%s5845_s7 + $0x60] sm:$0xf] %vm3417_vm10, %v3855_v25  ;;  %v3856_v34 = vpack.c.bf16 %v3262_v51, %v3262_v51 }
 0x318   : > { %3445 = vst.msk [vmem:[%s5845_s7 + $0x6c] sm:$0xf] %vm3417_vm10, %v3858_v26 }
 0x319   : > { %3443 = vst.msk [vmem:[%s5845_s7 + $0x64] sm:$0xf] %vm3417_vm10, %v3856_v34  ;;  %v4371_v49 = vpop.f32.mrb[60].mxu1 }
 0x31a   : > { %v3283_v33 = vadd.f32 %v4371_v49, %v5838_v10  ;;  %v3274_v44 = vpop.f32.mrb[61].mxu1 }
 0x31b   : > { %v3275_v36 = vadd.f32 %v5838_v10, %v3274_v44  ;;  %v4372_v5 = vpop.f32.mrb[62].mxu1 }
 0x31c   : > { %v3861_v14 = vpack.c.bf16 %v3283_v33, %v3283_v33  ;;  %v3286_v43 = vadd.f32 %v4372_v5, %v5838_v10  ;;  %v3277_v32 = vpop.f32.mrb[63].mxu1 }
 0x31d   : > { %v3859_v46 = vpack.c.bf16 %v3275_v36, %v3275_v36  ;;  %v3278_v40 = vadd.f32 %v5838_v10, %v3277_v32 }
 0x31e   : > { %3448 = vst.msk [vmem:[%s5845_s7 + $0x78] sm:$0xf] %vm3417_vm10, %v3861_v14  ;;  %v3862_v17 = vpack.c.bf16 %v3286_v43, %v3286_v43 }
 0x31f   : > { %3446 = vst.msk [vmem:[%s5845_s7 + $0x70] sm:$0xf] %vm3417_vm10, %v3859_v46  ;;  %v3860_v21 = vpack.c.bf16 %v3278_v40, %v3278_v40 }
 0x320   : > { %3449 = vst.msk [vmem:[%s5845_s7 + $0x7c] sm:$0xf] %vm3417_vm10, %v3862_v17 }
 0x321   : > { %3447 = vst.msk [vmem:[%s5845_s7 + $0x74] sm:$0xf] %vm3417_vm10, %v3860_v21 }
 0x322 PF: > { %s15_s20 = sadd.s32 1, %s4707_s20   ;;  %s6046_s18 = smov %s4703_s19 }
 0x323   : > { %p12_p5 = scmp.ge.s32.totalorder %s15_s20, 4   ;;  %s6047_s19 = smov %s6049_s21 }
 0x325   :  { %14 = sbr.rel (!%p12_p5) target bundleno = 2 (0x2), region = 78 }

</bundles_post_ra>
